<compile_context>
chip_gen: v7x
topology: tpu7x:2x2x1
jax: 0.10.0
libtpu: 0.0.40
codegen_flags: <defaults>
</compile_context>

<pallas_src>
import functools

import jax
import jax.numpy as jnp
from jax.experimental import pallas as pl
from jax.experimental.pallas import tpu as pltpu


def _round_up(a, b):
    return ((a + b - 1) // b) * b


def _make_vq_kernel(tt, t_valid, k_valid, k_pad):
    """Build the per-(batch-row, T-tile) VQ kernel with static sizes baked in."""

    def kernel(x_ref, cb_ref, cbt_ref, cbsq_ref,
               xd_ref, idx_ref, counts_ref, sq_ref):
        i = pl.program_id(1)  # T-tile index (reduction/"arbitrary" axis)

        @pl.when(i == 0)
        def _init():
            counts_ref[...] = jnp.zeros_like(counts_ref)
            sq_ref[...] = jnp.zeros_like(sq_ref)

        x = x_ref[0].astype(jnp.float32)           # (C, tt)   tokens on lanes
        cb = cb_ref[...].astype(jnp.float32)       # (K_pad, C)
        cb_t = cbt_ref[...].astype(jnp.float32)    # (C, K_pad)
        cb_sq = cbsq_ref[...]                      # (K_pad, 1)  precomputed |c|^2

        # distance[k, t] = |x_t|^2 - 2 <c_k, x_t> + |c_k|^2
        x_sq = jnp.sum(x * x, axis=0, keepdims=True)                    # (1, tt)
        dots = jnp.dot(cb, x, preferred_element_type=jnp.float32)       # (K_pad, tt)
        dist = x_sq - 2.0 * dots + cb_sq                                # (K_pad, tt)

        code_row = jax.lax.broadcasted_iota(jnp.int32, (k_pad, tt), 0)
        # mask padded codebook rows; argmax(-dist) with first-occurrence ties
        neg = jnp.where(code_row < k_valid, -dist, -jnp.inf)
        row_max = jnp.max(neg, axis=0, keepdims=True)                   # (1, tt)
        idx = jnp.min(jnp.where(neg == row_max, code_row, k_pad), axis=0)  # (tt,)
        idx_ref[...] = idx.astype(jnp.int32)[None, None, :]

        # dequantize: codebook^T @ one-hot   (lane-dense (C, tt) result)
        onehot = (code_row == idx[None, :]).astype(jnp.float32)         # (K_pad, tt)
        x_d = jnp.dot(cb_t, onehot, preferred_element_type=jnp.float32)  # (C, tt)
        xd_ref[...] = x_d[None].astype(xd_ref.dtype)

        # mask padded token columns (t >= T) out of the statistics
        t_col = i * tt + jax.lax.broadcasted_iota(jnp.int32, (1, tt), 1)
        valid = (t_col < t_valid).astype(jnp.float32)                   # (1, tt)

        counts_ref[...] += jnp.sum(onehot * valid, axis=1)[None, None, :]
        # sum((x - x_d)^2) == selected min distance (clamp cancellation noise)
        sq_ref[...] += jnp.sum(jnp.maximum(-row_max, 0.0) * valid)[None, None, None]

    return kernel


@functools.partial(jax.jit, static_argnames=("tile_t",))
def quantize_ema_reset_forward(x_nct, codebook, tile_t=1024):
    """Eval-mode forward of QuantizeEMAReset.

    x_nct:    (N, code_dim, T) float32   (channels-first, need_transpose path)
    codebook: (nb_code, code_dim) float32
    returns:  x_d (N, code_dim, T), code_idx (N, T), commit_loss (), perplexity ()
    """
    N, C, T = x_nct.shape
    K, D = codebook.shape
    assert C == D, "project_in is Identity only when encdec_dim == code_dim"

    # --- static tiling / padding decisions -------------------------------
    k_pad = _round_up(K, 128)                    # fill the 128-lane dimension
    tt = min(tile_t, _round_up(T, 128))          # token tile (lane axis)
    tt = _round_up(tt, 128)                      # keep stores unmasked
    t_pad = _round_up(T, tt)

    # --- wrapper-side (grid-invariant) prep ------------------------------
    x_f = x_nct.astype(jnp.float32)
    if t_pad != T:
        x_f = jnp.pad(x_f, ((0, 0), (0, 0), (0, t_pad - T)))
    cb = codebook.astype(jnp.float32)
    if k_pad != K:
        cb = jnp.pad(cb, ((0, k_pad - K), (0, 0)))
    cb_t = cb.T                                          # (C, K_pad)
    cb_sq = jnp.sum(cb * cb, axis=-1, keepdims=True)     # (K_pad, 1), hoisted

    grid = (N, t_pad // tt)
    kernel = _make_vq_kernel(tt=tt, t_valid=T, k_valid=K, k_pad=k_pad)

    out_shapes = (
        jax.ShapeDtypeStruct((N, C, t_pad), jnp.float32),   # x_d (conv layout)
        jax.ShapeDtypeStruct((N, 1, t_pad), jnp.int32),     # code_idx
        jax.ShapeDtypeStruct((N, 1, k_pad), jnp.float32),   # per-row code counts
        jax.ShapeDtypeStruct((N, 1, 1), jnp.float32),       # per-row sq error
    )

    xd_p, idx_p, counts_p, sq_p = pl.pallas_call(
        kernel,
        out_shape=out_shapes,
        grid_spec=pltpu.PrefetchScalarGridSpec(
            num_scalar_prefetch=0,
            grid=grid,
            in_specs=[
                pl.BlockSpec((1, C, tt), lambda n, i: (n, 0, i)),      # x tile
                pl.BlockSpec((k_pad, D), lambda n, i: (0, 0)),         # codebook
                pl.BlockSpec((D, k_pad), lambda n, i: (0, 0)),         # codebook^T
                pl.BlockSpec((k_pad, 1), lambda n, i: (0, 0)),         # |c|^2
            ],
            out_specs=[
                pl.BlockSpec((1, C, tt), lambda n, i: (n, 0, i)),      # x_d
                pl.BlockSpec((1, 1, tt), lambda n, i: (n, 0, i)),      # idx
                pl.BlockSpec((1, 1, k_pad), lambda n, i: (n, 0, 0)),   # counts
                pl.BlockSpec((1, 1, 1), lambda n, i: (n, 0, 0)),       # sq err
            ],
        ),
        compiler_params=pltpu.CompilerParams(
            # batch rows shard across the 2 TensorCores on v7x; T-tiles carry
            # the resident per-row accumulators so they stay "arbitrary".
            dimension_semantics=("parallel", "arbitrary")),
    )(x_f, cb, cb_t, cb_sq)

    # --- tiny finalizations in plain JAX ---------------------------------
    x_d = xd_p[:, :, :T]                                  # already (N, C, T)
    code_idx = idx_p[:, 0, :T]                            # (N, T)

    code_count = jnp.sum(counts_p[:, 0, :K], axis=0)      # (K,)
    prob = code_count / jnp.sum(code_count)
    perplexity = jnp.exp(-jnp.sum(prob * jnp.log(prob + 1e-7)))

    # commit loss = mse(x, x_d.detach()) over (N*T, D) tokens
    commit_loss = jnp.sum(sq_p) / (N * T * C)

    # straight-through: forward value of x_d is the dequantized vectors
    return x_d, code_idx, commit_loss, perplexity


def _reference_forward(x_nct, codebook):
    """Pure-JAX reference mirroring the PyTorch eval forward."""
    N, C, T = x_nct.shape
    x = jnp.transpose(x_nct, (0, 2, 1)).reshape(N * T, C)
    k_w = codebook.T
    dist = (jnp.sum(x ** 2, axis=-1, keepdims=True)
            - 2.0 * x @ k_w
            + jnp.sum(k_w ** 2, axis=0, keepdims=True))
    code_idx = jnp.argmax(-dist, axis=-1)
    x_d = codebook[code_idx]
    counts = jnp.zeros(codebook.shape[0]).at[code_idx].add(1.0)
    prob = counts / jnp.sum(counts)
    perplexity = jnp.exp(-jnp.sum(prob * jnp.log(prob + 1e-7)))
    commit = jnp.mean((x - x_d) ** 2)
    x_d = x_d.reshape(N, T, C).transpose(0, 2, 1)
    return x_d, code_idx.reshape(N, T), commit, perplexity


if __name__ == "__main__":
    nb_code, code_dim = 64, 32
    N, T = 2, 64

    key = jax.random.PRNGKey(0)
    kx, kc = jax.random.split(key)
    x = jax.random.normal(kx, (N, code_dim, T), dtype=jnp.float32)
    # deterministic synthetic codebook (module's buffer is (nb_code, code_dim))
    codebook = jax.random.normal(kc, (nb_code, code_dim), dtype=jnp.float32)

    x_d, code_idx, commit_loss, perplexity = quantize_ema_reset_forward(
        x, codebook)
    jax.block_until_ready((x_d, code_idx, commit_loss, perplexity))

    # correctness check against pure-JAX reference
    rxd, ridx, rcommit, rperp = _reference_forward(x, codebook)
    assert jnp.allclose(x_d, rxd, atol=1e-4, rtol=1e-4), "x_d mismatch"
    assert jnp.array_equal(code_idx, ridx.astype(code_idx.dtype)), "idx mismatch"
    assert jnp.allclose(commit_loss, rcommit, atol=1e-4, rtol=1e-4), \
        "commit_loss mismatch"
    assert jnp.allclose(perplexity, rperp, atol=1e-5, rtol=1e-5), \
        "perplexity mismatch"

    print("KERNEL_OK")
</pallas_src>

<mosaic_0001>
module attributes {stable_mosaic.version = 11 : i64} {
  func.func @kernel(%arg0: i32, %arg1: i32, %arg2: memref<1x32x128xf32, #tpu.memory_space<vmem>>, %arg3: memref<128x32xf32, #tpu.memory_space<vmem>>, %arg4: memref<32x128xf32, #tpu.memory_space<vmem>>, %arg5: memref<128x1xf32, #tpu.memory_space<vmem>>, %arg6: memref<1x32x128xf32, #tpu.memory_space<vmem>>, %arg7: memref<1x1x128xi32, #tpu.memory_space<vmem>>, %arg8: memref<1x1x128xf32, #tpu.memory_space<vmem>>, %arg9: memref<1x1x1xf32, #tpu.memory_space<vmem>>) attributes {dimension_semantics = [#tpu.dimension_semantics<parallel>, #tpu.dimension_semantics<arbitrary>], iteration_bounds = array<i64: 2, 1>, scalar_prefetch = 0 : i64, scratch_operands = 0 : i64, tpu.core_type = #tpu.core_type<tc>, window_params = [{transform_indices = @transform_0, window_bounds = array<i64: 1, 32, 128>}, {pipeline_mode = #tpu.pipeline_mode<synchronous>, transform_indices = @transform_1, window_bounds = array<i64: 128, 32>}, {pipeline_mode = #tpu.pipeline_mode<synchronous>, transform_indices = @transform_2, window_bounds = array<i64: 32, 128>}, {pipeline_mode = #tpu.pipeline_mode<synchronous>, transform_indices = @transform_3, window_bounds = array<i64: 128, 1>}, {transform_indices = @transform_4, window_bounds = array<i64: 1, 32, 128>}, {transform_indices = @transform_5, window_bounds = array<i64: 1, 1, 128>}, {transform_indices = @transform_6, window_bounds = array<i64: 1, 1, 128>}, {transform_indices = @transform_7, window_bounds = array<i64: 1, 1, 1>}]} {
    %c0_i32 = arith.constant 0 : i32
    %0 = arith.cmpi eq, %arg1, %c0_i32 : i32
    %1 = arith.extui %0 : i1 to i32
    %c0_i32_0 = arith.constant 0 : i32
    %2 = arith.cmpi ne, %1, %c0_i32_0 : i32
    scf.if %2 {
      %cst_40 = arith.constant 0.000000e+00 : f32
      %70 = vector.broadcast %cst_40 : f32 to vector<1x1x128xf32>
      %c0_41 = arith.constant 0 : index
      %c0_42 = arith.constant 0 : index
      %c0_43 = arith.constant 0 : index
      %71 = vector.load %arg8[%c0_41, %c0_42, %c0_43] : memref<1x1x128xf32, #tpu.memory_space<vmem>>, vector<1x1x128xf32>
      tpu.vector_store %arg8[%c0_41, %c0_42, %c0_43], %70 {strides = array<i32>} : memref<1x1x128xf32, #tpu.memory_space<vmem>>, vector<1x1x128xf32>,
      %cst_44 = arith.constant 0.000000e+00 : f32
      %72 = vector.broadcast %cst_44 : f32 to vector<1x1x1xf32>
      %c0_45 = arith.constant 0 : index
      %c0_46 = arith.constant 0 : index
      %c0_47 = arith.constant 0 : index
      %73 = vector.load %arg9[%c0_45, %c0_46, %c0_47] : memref<1x1x1xf32, #tpu.memory_space<vmem>>, vector<1x1x1xf32>
      tpu.vector_store %arg9[%c0_45, %c0_46, %c0_47], %72 {strides = array<i32>} : memref<1x1x1xf32, #tpu.memory_space<vmem>>, vector<1x1x1xf32>,
    } else {
    }
    %c0 = arith.constant 0 : index
    %c0_1 = arith.constant 0 : index
    %c0_2 = arith.constant 0 : index
    %3 = vector.load %arg2[%c0, %c0_1, %c0_2] : memref<1x32x128xf32, #tpu.memory_space<vmem>>, vector<1x32x128xf32>
    %4 = vector.shape_cast %3 : vector<1x32x128xf32> to vector<32x128xf32>
    %c0_3 = arith.constant 0 : index
    %c0_4 = arith.constant 0 : index
    %5 = vector.load %arg3[%c0_3, %c0_4] : memref<128x32xf32, #tpu.memory_space<vmem>>, vector<128x32xf32>
    %c0_5 = arith.constant 0 : index
    %c0_6 = arith.constant 0 : index
    %6 = vector.load %arg4[%c0_5, %c0_6] : memref<32x128xf32, #tpu.memory_space<vmem>>, vector<32x128xf32>
    %c0_7 = arith.constant 0 : index
    %c0_8 = arith.constant 0 : index
    %7 = vector.load %arg5[%c0_7, %c0_8] : memref<128x1xf32, #tpu.memory_space<vmem>>, vector<128x1xf32>
    %8 = arith.mulf %4, %4 : vector<32x128xf32>
    %cst = arith.constant dense<0.000000e+00> : vector<128xf32>
    %9 = vector.multi_reduction <add>, %8, %cst [0] : vector<32x128xf32> to vector<128xf32>
    %10 = vector.shape_cast %9 : vector<128xf32> to vector<1x128xf32>
    %cst_9 = arith.constant dense<0.000000e+00> : vector<128x128xf32>
    %11 = tpu.matmul %5, %4, %cst_9 {dimension_numbers = #tpu.dot_dimension_numbers<[1], [0], [0], [1], [0, 0, 1, 1], [], []>} : vector<128x32xf32>, vector<32x128xf32>, vector<128x128xf32> -> vector<128x128xf32>
    %cst_10 = arith.constant 2.000000e+00 : f32
    %12 = vector.broadcast %cst_10 : f32 to vector<128x128xf32>
    %13 = arith.mulf %12, %11 : vector<128x128xf32>
    %14 = vector.broadcast %10 : vector<1x128xf32> to vector<128x128xf32>
    %15 = arith.subf %14, %13 : vector<128x128xf32>
    %16 = vector.broadcast %7 : vector<128x1xf32> to vector<128x128xf32>
    %17 = arith.addf %15, %16 : vector<128x128xf32>
    %18 = tpu.iota {dimensions = array<i32: 0>} : vector<128x128xi32>
    %c64_i32 = arith.constant 64 : i32
    %19 = vector.broadcast %c64_i32 : i32 to vector<128x128xi32>
    %20 = arith.cmpi slt, %18, %19 : vector<128x128xi32>
    %cst_11 = arith.constant 0.000000e+00 : f32
    %21 = vector.broadcast %cst_11 : f32 to vector<128x128xf32>
    %22 = arith.subf %21, %17 : vector<128x128xf32>
    %cst_12 = arith.constant 0xFF800000 : f32
    %23 = vector.broadcast %cst_12 : f32 to vector<128x128xf32>
    %24 = arith.select %20, %22, %23 : vector<128x128xi1>, vector<128x128xf32>
    %cst_13 = arith.constant dense<0xFF800000> : vector<128xf32>
    %25 = vector.multi_reduction <maximumf>, %24, %cst_13 [0] : vector<128x128xf32> to vector<128xf32>
    %26 = vector.shape_cast %25 : vector<128xf32> to vector<1x128xf32>
    %27 = vector.broadcast %26 : vector<1x128xf32> to vector<128x128xf32>
    %28 = arith.cmpf oeq, %24, %27 : vector<128x128xf32>
    %c128_i32 = arith.constant 128 : i32
    %29 = vector.broadcast %c128_i32 : i32 to vector<128x128xi32>
    %30 = arith.select %28, %18, %29 : vector<128x128xi1>, vector<128x128xi32>
    %cst_14 = arith.constant dense<2147483647> : vector<128xi32>
    %31 = vector.multi_reduction <minsi>, %30, %cst_14 [0] : vector<128x128xi32> to vector<128xi32>
    %32 = vector.shape_cast %31 : vector<128xi32> to vector<1x1x128xi32>
    %c0_15 = arith.constant 0 : index
    %c0_16 = arith.constant 0 : index
    %c0_17 = arith.constant 0 : index
    %33 = vector.load %arg7[%c0_15, %c0_16, %c0_17] : memref<1x1x128xi32, #tpu.memory_space<vmem>>, vector<1x1x128xi32>
    tpu.vector_store %arg7[%c0_15, %c0_16, %c0_17], %32 {strides = array<i32>} : memref<1x1x128xi32, #tpu.memory_space<vmem>>, vector<1x1x128xi32>,
    %34 = vector.shape_cast %31 : vector<128xi32> to vector<1x128xi32>
    %35 = vector.broadcast %34 : vector<1x128xi32> to vector<128x128xi32>
    %36 = arith.cmpi eq, %18, %35 : vector<128x128xi32>
    %37 = arith.extui %36 : vector<128x128xi1> to vector<128x128xi32>
    %38 = arith.sitofp %37 : vector<128x128xi32> to vector<128x128xf32>
    %cst_18 = arith.constant dense<0.000000e+00> : vector<32x128xf32>
    %39 = tpu.matmul %6, %38, %cst_18 {dimension_numbers = #tpu.dot_dimension_numbers<[1], [0], [0], [1], [0, 0, 1, 1], [], []>} : vector<32x128xf32>, vector<128x128xf32>, vector<32x128xf32> -> vector<32x128xf32>
    %40 = vector.shape_cast %39 : vector<32x128xf32> to vector<1x32x128xf32>
    %c0_19 = arith.constant 0 : index
    %c0_20 = arith.constant 0 : index
    %c0_21 = arith.constant 0 : index
    %41 = vector.load %arg6[%c0_19, %c0_20, %c0_21] : memref<1x32x128xf32, #tpu.memory_space<vmem>>, vector<1x32x128xf32>
    tpu.vector_store %arg6[%c0_19, %c0_20, %c0_21], %40 {strides = array<i32>} : memref<1x32x128xf32, #tpu.memory_space<vmem>>, vector<1x32x128xf32>,
    %c128_i32_22 = arith.constant 128 : i32
    %42 = arith.muli %arg1, %c128_i32_22 : i32
    %43 = tpu.iota {dimensions = array<i32: 1>} : vector<1x128xi32>
    %44 = vector.broadcast %42 : i32 to vector<1x128xi32>
    %45 = arith.addi %44, %43 : vector<1x128xi32>
    %c64_i32_23 = arith.constant 64 : i32
    %46 = vector.broadcast %c64_i32_23 : i32 to vector<1x128xi32>
    %47 = arith.cmpi slt, %45, %46 : vector<1x128xi32>
    %48 = arith.extui %47 : vector<1x128xi1> to vector<1x128xi32>
    %49 = arith.sitofp %48 : vector<1x128xi32> to vector<1x128xf32>
    %c0_24 = arith.constant 0 : index
    %c0_25 = arith.constant 0 : index
    %c0_26 = arith.constant 0 : index
    %50 = vector.load %arg8[%c0_24, %c0_25, %c0_26] : memref<1x1x128xf32, #tpu.memory_space<vmem>>, vector<1x1x128xf32>
    %51 = vector.broadcast %49 : vector<1x128xf32> to vector<128x128xf32>
    %52 = arith.mulf %38, %51 : vector<128x128xf32>
    %cst_27 = arith.constant dense<0.000000e+00> : vector<128xf32>
    %53 = vector.multi_reduction <add>, %52, %cst_27 [1] : vector<128x128xf32> to vector<128xf32>
    %54 = vector.shape_cast %53 : vector<128xf32> to vector<1x1x128xf32>
    %55 = arith.addf %50, %54 : vector<1x1x128xf32>
    %c0_28 = arith.constant 0 : index
    %c0_29 = arith.constant 0 : index
    %c0_30 = arith.constant 0 : index
    %56 = vector.load %arg8[%c0_28, %c0_29, %c0_30] : memref<1x1x128xf32, #tpu.memory_space<vmem>>, vector<1x1x128xf32>
    tpu.vector_store %arg8[%c0_28, %c0_29, %c0_30], %55 {strides = array<i32>} : memref<1x1x128xf32, #tpu.memory_space<vmem>>, vector<1x1x128xf32>,
    %c0_31 = arith.constant 0 : index
    %c0_32 = arith.constant 0 : index
    %c0_33 = arith.constant 0 : index
    %57 = vector.load %arg9[%c0_31, %c0_32, %c0_33] : memref<1x1x1xf32, #tpu.memory_space<vmem>>, vector<1x1x1xf32>
    %cst_34 = arith.constant 0.000000e+00 : f32
    %58 = vector.broadcast %cst_34 : f32 to vector<1x128xf32>
    %59 = arith.subf %58, %26 : vector<1x128xf32>
    %cst_35 = arith.constant 0.000000e+00 : f32
    %60 = vector.broadcast %cst_35 : f32 to vector<1x128xf32>
    %61 = arith.maximumf %59, %60 : vector<1x128xf32>
    %62 = arith.mulf %61, %49 : vector<1x128xf32>
    %63 = vector.shape_cast %62 : vector<1x128xf32> to vector<1x1x128xf32>
    %cst_36 = arith.constant dense<0.000000e+00> : vector<1xf32>
    %64 = vector.multi_reduction <add>, %63, %cst_36 [1, 2] : vector<1x1x128xf32> to vector<1xf32>
    %65 = vector.shape_cast %64 : vector<1xf32> to vector<1x1x1xf32>
    %66 = vector.extract %65[0, 0, 0] : f32 from vector<1x1x1xf32>
    %67 = vector.broadcast %66 : f32 to vector<1x1x1xf32>
    %68 = arith.addf %57, %67 : vector<1x1x1xf32>
    %c0_37 = arith.constant 0 : index
    %c0_38 = arith.constant 0 : index
    %c0_39 = arith.constant 0 : index
    %69 = vector.load %arg9[%c0_37, %c0_38, %c0_39] : memref<1x1x1xf32, #tpu.memory_space<vmem>>, vector<1x1x1xf32>
    tpu.vector_store %arg9[%c0_37, %c0_38, %c0_39], %68 {strides = array<i32>} : memref<1x1x1xf32, #tpu.memory_space<vmem>>, vector<1x1x1xf32>,
    return
  }
  func.func @transform_0(%arg0: i32, %arg1: i32) -> (i32, i32, i32) {
    %c0_i32 = arith.constant 0 : i32
    %c0_i32_0 = arith.constant 0 : i32
    return %arg0, %c0_i32, %arg1 : i32, i32, i32
  }
  func.func @transform_1(%arg0: i32, %arg1: i32) -> (i32, i32) {
    %c0_i32 = arith.constant 0 : i32
    %c0_i32_0 = arith.constant 0 : i32
    %c0_i32_1 = arith.constant 0 : i32
    return %c0_i32, %c0_i32_0 : i32, i32
  }
  func.func @transform_2(%arg0: i32, %arg1: i32) -> (i32, i32) {
    %c0_i32 = arith.constant 0 : i32
    %c0_i32_0 = arith.constant 0 : i32
    %c0_i32_1 = arith.constant 0 : i32
    return %c0_i32, %c0_i32_0 : i32, i32
  }
  func.func @transform_3(%arg0: i32, %arg1: i32) -> (i32, i32) {
    %c0_i32 = arith.constant 0 : i32
    %c0_i32_0 = arith.constant 0 : i32
    %c0_i32_1 = arith.constant 0 : i32
    return %c0_i32, %c0_i32_0 : i32, i32
  }
  func.func @transform_4(%arg0: i32, %arg1: i32) -> (i32, i32, i32) {
    %c0_i32 = arith.constant 0 : i32
    %c0_i32_0 = arith.constant 0 : i32
    return %arg0, %c0_i32, %arg1 : i32, i32, i32
  }
  func.func @transform_5(%arg0: i32, %arg1: i32) -> (i32, i32, i32) {
    %c0_i32 = arith.constant 0 : i32
    %c0_i32_0 = arith.constant 0 : i32
    return %arg0, %c0_i32, %arg1 : i32, i32, i32
  }
  func.func @transform_6(%arg0: i32, %arg1: i32) -> (i32, i32, i32) {
    %c0_i32 = arith.constant 0 : i32
    %c0_i32_0 = arith.constant 0 : i32
    %c0_i32_1 = arith.constant 0 : i32
    return %arg0, %c0_i32, %c0_i32_0 : i32, i32, i32
  }
  func.func @transform_7(%arg0: i32, %arg1: i32) -> (i32, i32, i32) {
    %c0_i32 = arith.constant 0 : i32
    %c0_i32_0 = arith.constant 0 : i32
    %c0_i32_1 = arith.constant 0 : i32
    return %arg0, %c0_i32, %c0_i32_0 : i32, i32, i32
  }
}

</mosaic_0001>

<bundles_post_ra>
// kernel: quantize_ema_reset_forward.1
= control target key start
LH: loop header
LB: loop body
LE: loop exit
PB: predicated region body
PF: predicated region fallthrough
CT: control target
= control target key end

     0   :  { %s4128_s0 = inlined_call_operand.vmem [shape: f32[2,32,128], index: 0, kind: input, shape index: {}]   ;;  %s4129_s1 = inlined_call_operand.vmem [shape: f32[128,32], index: 1, kind: input, shape index: {}]   ;;  %s4130_s2 = inlined_call_operand.vmem [shape: f32[32,128], index: 2, kind: input, shape index: {}]   ;;  %s4131_s3 = inlined_call_operand.vmem [shape: f32[128,1], index: 3, kind: input, shape index: {}]   ;;  %s4132_s4 = inlined_call_operand.hbm [shape: f32[2,32,128], index: 4, kind: output, shape index: {0}]   ;;  %s4133_s5 = inlined_call_operand.hbm [shape: s32[2,1,128], index: 5, kind: output, shape index: {1}]   ;;  %s4134_s6 = inlined_call_operand.vmem [shape: f32[2,1,128], index: 6, kind: output, shape index: {2}]   ;;  %s4135_s7 = inlined_call_operand.vmem [shape: f32[2,1,1], index: 7, kind: output, shape index: {3}]  }
   0x1   :  { %4136 = sst [smem:[#allocation8_spill]] %s4128_s0 }
   0x2   :  { %4137 = sst [smem:[#allocation9_spill]] %s4129_s1 }
   0x3   :  { %4138 = sst [smem:[#allocation10_spill]] %s4130_s2 }
   0x4   :  { %4139 = sst [smem:[#allocation11_spill]] %s4131_s3 }
   0x5   :  { %13 = vsyncpa [#allocation3], 0 }
   0x6   :  { %15 = vsyncpa [#allocation3 + $0x1], 0 }
   0x7   :  { %16 = vsyncpa [#allocation5], 0 }
   0x8   :  { %18 = vsyncpa [#allocation5 + $0x1], 0  ;;  %s3212_s24 = smov 0   ;;  %s3214_s25 = smov 0  }
   0x9   :  { %s3216_s26 = smov 0   ;;  %s3218_s27 = smov 0  }
   0xa   :  { %s3220_s28 = smov 0   ;;  %s3222_s29 = smov 0  }
   0xb LB: > { %s2759_s30 = sadd.s32 4294967295, %s3162_s29   ;;  %s2760_s8 = sadd.s32 4294967294, %s3162_s29   ;;  %s3162_s29 = sphi %s3222_s29, %s24_s29   ;;  %s3158_s28 = sphi %s3220_s28, %s4150_s28   ;;  %s3154_s27 = sphi %s3218_s27, %s4149_s27   ;;  %s3150_s26 = sphi %s3216_s26, %s4148_s26   ;;  %s3146_s25 = sphi %s3214_s25, %s4147_s25   ;;  %s3142_s24 = sphi %s3212_s24, %s4146_s24  }
   0xc   : > { %s36_s9 = sadd.s32 1, %s3158_s28  ;;  %s136_s10 = sadd.s32 1, %s3150_s26 }
   0xd   : > { %p38_p0 = scmp.ge.s32.totalorder %s36_s9, 2  ;;  %p146_p1 = scmp.ne.s32.totalorder %s3150_s26, %s3146_s25 }
   0xe   : > { %p147_p2 = scmp.eq.s32.totalorder %s2759_s30, 1  ;;  %p152_p3 = scmp.ne.s32.totalorder %s3146_s25, %s3142_s24 }
   0xf   : > { %s4152_s9 = smov (%p38_p0, %s36_s9), 0  ;;  %p153_p5 = scmp.eq.s32.totalorder %s2760_s8, 1 }
  0x10   : > { %p3252_p4 = por %p147_p2, %p146_p1  ;;  %s131_s12 = ssub.s32 %s3158_s28, %s4152_s9 }
  0x11   : > { %p2763_p6 = scmp.ge.s32.totalorder %s3162_s29, 1  ;;  %p134_p7 = scmp.eq.s32.totalorder %s131_s12, 0 }
  0x12   : > { %p3259_p8 = por %p153_p5, %p152_p3  ;;  %p271_p9 = scmp.lt.s32.totalorder %s3162_s29, 3 }
  0x13   : > { %s3265_s14 = scalar_select %p134_p7, %s3150_s26, %s136_s10  }
  0x14   : > { %p272_p10 = pnand %p2763_p6, %p271_p9 }
  0x15   : > { %p316_p11 = scmp.lt.s32.totalorder (!%p272_p10), %s3154_s27, 1  ;;  %s4142_s1 = sld [smem:[#allocation9_spill]] (!%p272_p10)  ;;  %vm390_vm0 = vcmask (!%p272_p10), 261120   ;;  %v3164_v1 = vmov (!%p272_p10), 0  }
  0x16   : > { %275 = sbr.rel (%p272_p10) target bundleno = 702 (0x2be), region = 36  ;;  %3051 = vset.pattern.permute.xlu1 (!%p272_p10), %v3164_v1  ;;  %3050 = vset.pattern.permute.xlu0 (!%p272_p10), %v3164_v1  ;;  %s4143_s3 = sld [smem:[#allocation11_spill]] (!%p272_p10) }
  0x17   : > { %s4144_s0 = sld [smem:[#allocation8_spill]] (!%p272_p10)  ;;  %s4145_s2 = sld [smem:[#allocation10_spill]] (!%p272_p10) }
  0x18   : > { %s2831_s16 = sshll.u32 (!%p272_p10), %s3154_s27, 9  ;;  %s2827_s21 = sshll.u32 (!%p272_p10), %s3154_s27, 4 }
  0x19   : > { %s4009_s19 = scalar_lea.hbm (!%p272_p10), %s4132_s4, %s2831_s16  ;;  %s3168_s16 = smov (!%p272_p10), [#allocation2]  }
  0x1b   : > { %v341_v0 = vld [vmem:[%s4142_s1] sm:$0xff] (!%p272_p10)  ;;  %v342_v23 = vld [vmem:[%s4142_s1 + $0x8] sm:$0xff] (!%p272_p10)  ;;  %v343_v24 = vld [vmem:[%s4142_s1 + $0x10] sm:$0xff] (!%p272_p10) }
  0x1c   : > { %2880 = vmatprep.mubr.msk.f32.mxu0 (!%p272_p10), %vm390_vm0, %v341_v0  ;;  %v363_v2 = vld [vmem:[%s4143_s3 + $0x10] sm:$0xff] (!%p272_p10)  ;;  %v361_v3 = vld [vmem:[%s4143_s3] sm:$0xff] (!%p272_p10)  ;;  %v364_v4 = vld [vmem:[%s4143_s3 + $0x18] sm:$0xff] (!%p272_p10) }
  0x1d   : > { %s3273_s17 = scalar_select %p316_p11, %s3154_s27, 1  ;;  %628 = vperm.xlu1 %3051, %v363_v2   ;;  %618 = vperm.xlu0 %3050, %v361_v3   ;;  %v362_v5 = vld [vmem:[%s4143_s3 + $0x8] sm:$0xff]  ;;  %v365_v18 = vld [vmem:[%s4143_s3 + $0x20] sm:$0xff]  ;;  %v368_v20 = vld [vmem:[%s4143_s3 + $0x38] sm:$0xff] }
  0x1e   : > { %v366_v15 = vld [vmem:[%s4143_s3 + $0x28] sm:$0xff]  ;;  %v367_v22 = vld [vmem:[%s4143_s3 + $0x30] sm:$0xff]  ;;  %v344_v25 = vld [vmem:[%s4142_s1 + $0x18] sm:$0xff] }
  0x1f   : > { %s2830_s22 = sshll.u32 %s3273_s17, 5  ;;  %v345_v26 = vld [vmem:[%s4142_s1 + $0x20] sm:$0xff]  ;;  %v346_v27 = vld [vmem:[%s4142_s1 + $0x28] sm:$0xff]  ;;  %v347_v28 = vld [vmem:[%s4142_s1 + $0x30] sm:$0xff]  ;;  %s3672_s20 = scalar_lea.vmem %s4135_s7, %s3273_s17 }
  0x20   : > { %s323_s12 = scalar_lea.vmem %s4144_s0, %s2830_s22  ;;  %v348_v29 = vld [vmem:[%s4142_s1 + $0x38] sm:$0xff]  ;;  %v349_v31 = vld [vmem:[%s4142_s1 + $0x40] sm:$0xff]  ;;  %v350_v32 = vld [vmem:[%s4142_s1 + $0x48] sm:$0xff]  ;;  %s3481_s22 = sand.u32 1, %s3146_s25  }
  0x21   : > { %v337_v6 = vld [vmem:[%s323_s12] sm:$0xff]  ;;  %v338_v7 = vld [vmem:[%s323_s12 + $0x8] sm:$0xff]  ;;  %v339_v8 = vld [vmem:[%s323_s12 + $0x10] sm:$0xff]  ;;  %633 = vperm.xlu1 %3051, %v364_v4   ;;  %623 = vperm.xlu0 %3050, %v362_v5   ;;  %s305_s23 = scalar_lea.vmem [#allocation4], %s3481_s22  ;;  %s3998_s8 = scalar_lea.vmem %s4134_s6, %s3273_s17 }
  0x22   : > { %v377_v9 = vmul.f32 %v337_v6, %v337_v6  ;;  %v378_v10 = vmul.f32 %v338_v7, %v338_v7  ;;  %v2942_v11 = vpack.c.bf16 %v338_v7, %v337_v6  ;;  %v340_v12 = vld [vmem:[%s323_s12 + $0x18] sm:$0xff]  ;;  %v379_v13 = vmul.f32 %v339_v8, %v339_v8  ;;  %v351_v33 = vld [vmem:[%s4142_s1 + $0x50] sm:$0xff]  ;;  %v357_v34 = vld [vmem:[%s4145_s2] sm:$0xff]  ;;  %s2764_s10 = sshll.u32 %s3481_s22, 5  ;;  %s2611_s30 = sshll.u32 %s305_s23, 4  ;;  %s4019_s30 = int_to_ptr.vmem [resolvable:$true] %s2611_s30 }
  0x23   : > { %v2946_v14 = vpack.c.bf16 %v340_v12, %v339_v8  ;;  %v380_v17 = vmul.f32 %v340_v12, %v340_v12  ;;  %2936 = vmatprep.mubr.f32.mxu1 %v357_v34  ;;  %v352_v36 = vld [vmem:[%s4142_s1 + $0x58] sm:$0xff]  ;;  %v353_v37 = vld [vmem:[%s4142_s1 + $0x60] sm:$0xff]  ;;  %v354_v39 = vld [vmem:[%s4142_s1 + $0x68] sm:$0xff]  ;;  %s299_s12 = scalar_lea.vmem [#allocation2], %s2764_s10  ;;  %s3056_s17 = sshll.u32 %s3168_s16, 4  ;;  %s3057_s17 = int_to_ptr.vmem [resolvable:$false] %s3056_s17 }
  0x24   : > { %v381_v16 = vadd.f32 %v378_v10, %v377_v9  ;;  %2943 = vmatprep.subr.bf16.mxu0 %v2942_v11  ;;  %v355_v40 = vld [vmem:[%s4142_s1 + $0x70] sm:$0xff]  ;;  %v356_v42 = vld [vmem:[%s4142_s1 + $0x78] sm:$0xff]  ;;  %s2594_s15 = sshll.u32 %s299_s12, 4  ;;  %s4017_s1 = scalar_lea.hbm %s4133_s5, %s2827_s21  ;;  %s4004_s15 = int_to_ptr.vmem [resolvable:$true] %s2594_s15 }
  0x25   : > { %2945 = vmatpush3.bf16.msra.mxu0 %v2942_v11  ;;  %643 = vperm.xlu1 %3051, %v366_v15   ;;  %s3052_s3 = scalar_lea.vmem %s4004_s15, 512  ;;  %s3058_s27 = scalar_lea.vmem %s3057_s17, 1024 }
  0x26   : > { %v382_v19 = vadd.f32 %v381_v16, %v379_v13  ;;  %2947 = vmatprep.subr.bf16.mxu0 %v2946_v14  ;;  %638 = vperm.xlu0 %3050, %v365_v18   ;;  %p3053_p12 = scmp.ne.s32.totalorder %s4004_s15, %s3052_s3  ;;  %p3059_p1 = scmp.lt.s32.totalorder %s4004_s15, %s3057_s17 }
  0x27   : > { %p3060_p2 = scmp.lt.s32.totalorder %s3058_s27, %s3052_s3 }
  0x28   : > { %v383_v21 = vadd.f32 %v382_v19, %v380_v17  ;;  %p3054_p13 = pnand %p3053_p12, %p3252_p4 }
  0x29   : > { %2949 = vmatpush3.bf16.msra.mxu0 %v2946_v14  ;;  %653 = vperm.xlu1 %3051, %v368_v20   ;;  %p3061_p3 = por %p3060_p2, %p3059_p1 }
  0x2a   : > { %648 = vperm.xlu0 %3050, %v367_v22   ;;  %v384_v30 = vrot.slane %v383_v21, 4  ;;  %p3055_p0 = pneg %p3054_p13 }
  0x2c   : > { %2881 = vmatmul.mubr.msk.f32.vlgmr.msra.gmra.mrb[0].mxu0 %vm390_vm0, %v342_v23  ;;  %v385_v35 = vadd.f32 %v384_v30, %v383_v21  ;;  %p3062_p5 = pnand %p3061_p3, %p3055_p0 }
  0x2d   : > { %2883 = vmatprep.mubr.msk.f32.mxu0 %vm390_vm0, %v343_v24 }
  0x2e   : > { %v386_v38 = vrot.slane %v385_v35, 2 }
  0x30   : > { %2884 = vmatmul.mubr.msk.f32.gmra.mrb[2].mxu0 %vm390_vm0, %v344_v25  ;;  %v387_v41 = vadd.f32 %v386_v38, %v385_v35 }
  0x31   : > { %2886 = vmatprep.mubr.msk.f32.mxu0 %vm390_vm0, %v345_v26 }
  0x32   : > { %v388_v43 = vrot.slane %v387_v41, 1 }
  0x34   : > { %2887 = vmatmul.mubr.msk.f32.gmra.mrb[4].mxu0 %vm390_vm0, %v346_v27  ;;  %v389_v45 = vadd.f32 %v388_v43, %v387_v41 }
  0x35   : > { %2889 = vmatprep.mubr.msk.f32.mxu0 %vm390_vm0, %v347_v28 }
  0x38   : > { %2890 = vmatmul.mubr.msk.f32.gmra.mrb[6].mxu0 %vm390_vm0, %v348_v29 }
  0x39   : > { %2892 = vmatprep.mubr.msk.f32.mxu0 %vm390_vm0, %v349_v31 }
  0x3c   : > { %2893 = vmatmul.mubr.msk.f32.gmra.mrb[8].mxu0 %vm390_vm0, %v350_v32 }
  0x3d   : > { %2895 = vmatprep.mubr.msk.f32.mxu0 %vm390_vm0, %v351_v33 }
  0x40   : > { %2896 = vmatmul.mubr.msk.f32.gmra.mrb[10].mxu0 %vm390_vm0, %v352_v36  ;;  %v712_v36 = vlaneseq }
  0x41   : > { %2898 = vmatprep.mubr.msk.f32.mxu0 %vm390_vm0, %v353_v37 }
  0x44   : > { %2899 = vmatmul.mubr.msk.f32.gmra.mrb[12].mxu0 %vm390_vm0, %v354_v39  ;;  %v3383_v39 = vshrl.u32 %v712_v36, 7 }
  0x45   : > { %2901 = vmatprep.mubr.msk.f32.mxu0 %vm390_vm0, %v355_v40 }
  0x46   : > { %v3389_v43 = vadd.s32 24, %v3383_v39 }
  0x48   : > { %2902 = vmatmul.mubr.msk.f32.gmra.mrb[14].mxu0 %vm390_vm0, %v356_v42  ;;  %v3386_v42 = vadd.s32 16, %v3383_v39 }
  0x9c   : > { %v629_v44 = vpop.permute.xlu1 %628  ;;  %v619_v46 = vpop.permute.xlu0 %618 }
  0xa0   : > { %v634_v52 = vpop.permute.xlu1 %633  ;;  %v624_v55 = vpop.permute.xlu0 %623 }
  0xa4   : > { %v644_v0 = vpop.permute.xlu1 %643 }
  0xa5   : > { %v639_v3 = vpop.permute.xlu0 %638 }
  0xa8   : > { %v654_v18 = vpop.permute.xlu1 %653 }
  0xa9   : > { %v649_v22 = vpop.permute.xlu0 %648 }
  0xff   : > { %v2882_v47 = vpop.f32.mrb[0].mxu0 }
 0x100   : > { %v585_v48 = vmul.f32 2.0, %v2882_v47  ;;  %v505_v49 = vpop.f32.mrb[1].mxu0  ;;  %v3398_v47 = vadd.s32 80, %v3383_v39 }
 0x101   : > { %v584_v50 = vmul.f32 2.0, %v505_v49  ;;  %v3404_v49 = vadd.s32 112, %v3383_v39 }
 0x102   : > { %v601_v51 = vsub.f32 %v389_v45, %v585_v48  ;;  %v3401_v48 = vadd.s32 88, %v3383_v39 }
 0x103   : > { %v600_v53 = vsub.f32 %v389_v45, %v584_v50  ;;  %v2885_v54 = vpop.f32.mrb[2].mxu0  ;;  %v3407_v50 = vadd.s32 120, %v3383_v39 }
 0x104   : > { %v587_v56 = vmul.f32 2.0, %v2885_v54  ;;  %v515_v57 = vpop.f32.mrb[3].mxu0  ;;  %v3366_v2 = vadd.f32 %v624_v55, %v601_v51  ;;  %v3418_v54 = vadd.s32 40, %v3383_v39  ;;  %v3421_v55 = vadd.s32 64, %v3383_v39 }
 0x105   : > { %v586_v58 = vmul.f32 2.0, %v515_v57  ;;  %v3368_v5 = vadd.f32 %v619_v46, %v600_v53  ;;  %v3395_v46 = vadd.s32 56, %v3383_v39  ;;  %v3415_v53 = vadd.s32 32, %v3383_v39 }
 0x106   : > { %v603_v59 = vsub.f32 %v389_v45, %v587_v56  ;;  %v746_v13 = vsub.f32 0.0, %v3366_v2  ;;  %v3424_v56 = vadd.s32 72, %v3383_v39 }
 0x107   : > { %v602_v60 = vsub.f32 %v389_v45, %v586_v58  ;;  %v2888_v61 = vpop.f32.mrb[4].mxu0  ;;  %v745_v17 = vsub.f32 0.0, %v3368_v5 }
 0x108   : > { %v589_v62 = vmul.f32 2.0, %v2888_v61  ;;  %v525_v63 = vpop.f32.mrb[5].mxu0  ;;  %v699_v14 = vadd.f32 %v634_v52, %v603_v59  ;;  %v3412_v52 = vadd.s32 8, %v3383_v39 }
 0x109   : > { %v588_v1 = vmul.f32 2.0, %v525_v63  ;;  %v698_v19 = vadd.f32 %v629_v44, %v602_v60 }
 0x10a   : > { %v605_v4 = vsub.f32 %v389_v45, %v589_v62  ;;  %v748_v27 = vsub.f32 0.0, %v699_v14 }
 0x10b   : > { %v604_v6 = vsub.f32 %v389_v45, %v588_v1  ;;  %v2891_v7 = vpop.f32.mrb[6].mxu0  ;;  %v747_v29 = vsub.f32 0.0, %v698_v19 }
 0x10c   : > { %v3370_v8 = vadd.f32 %v644_v0, %v605_v4  ;;  %v591_v9 = vmul.f32 2.0, %v2891_v7  ;;  %v535_v10 = vpop.f32.mrb[7].mxu0 }
 0x10d   : > { %v3372_v11 = vadd.f32 %v639_v3, %v604_v6  ;;  %v590_v12 = vmul.f32 2.0, %v535_v10 }
 0x10e   : > { %v750_v15 = vsub.f32 0.0, %v3370_v8  ;;  %v607_v16 = vsub.f32 %v389_v45, %v591_v9  ;;  %v3463_v8 = vadd.s32 104, %v3383_v39 }
 0x10f   : > { %v749_v20 = vsub.f32 0.0, %v3372_v11  ;;  %v606_v21 = vsub.f32 %v389_v45, %v590_v12  ;;  %v3392_v45 = vadd.s32 48, %v3383_v39  ;;  %v3460_v12 = vadd.s32 96, %v3383_v39 }
 0x110   : > { %v778_v23 = vmax.f32 %v746_v13, %v750_v15  ;;  %v703_v24 = vadd.f32 %v654_v18, %v607_v16 }
 0x111   : > { %v777_v25 = vmax.f32 %v745_v17, %v749_v20  ;;  %v702_v26 = vadd.f32 %v649_v22, %v606_v21 }
 0x112   : > { %v752_v28 = vsub.f32 0.0, %v703_v24 }
 0x113   : > { %v789_v30 = vmax.f32 %v777_v25, %v778_v23  ;;  %v751_v31 = vsub.f32 0.0, %v702_v26 }
 0x114   : > { %v780_v32 = vmax.f32 %v748_v27, %v752_v28 }
 0x115   : > { %v779_v33 = vmax.f32 %v747_v29, %v751_v31 }
 0x117   : > { %v790_v34 = vmax.f32 %v779_v33, %v780_v32  ;;  %v3165_v33 = vmov 0.0  }
 0x118   : > { %334 = vst [vmem:[%s3998_s8] sm:$0x1] %v3165_v33 }
 0x119   : > { %v791_v35 = vmax.f32 %v789_v30, %v790_v34 }
 0x11b   : > { %v792_v37 = vrot.slane %v791_v35, 4 }
 0x11d   : > { %v793_v38 = vmax.f32 %v791_v35, %v792_v37  ;;  %v3166_v37 = vmov 1.0|1.0  }
 0x11f   : > { %v794_v40 = vrot.slane %v793_v38, 2 }
 0x121   : > { %v795_v41 = vmax.f32 %v793_v38, %v794_v40 }
 0x123   : > { %v796_v44 = vrot.slane %v795_v41, 1 }
 0x125   : > { %v3409_v51 = vmax.f32 %v795_v41, %v796_v44 }
 0x127   : > { %vm800_vm1 = vcmp.eq.f32.partialorder %v747_v29, %v3409_v51  ;;  %vm801_vm2 = vcmp.eq.f32.partialorder %v748_v27, %v3409_v51  ;;  %vm804_vm3 = vcmp.eq.f32.partialorder %v751_v31, %v3409_v51  ;;  %vm805_vm4 = vcmp.eq.f32.partialorder %v752_v28, %v3409_v51 }
 0x128   : > { %vm2783_vm5 = vcmp.eq.f32.partialorder %v3409_v51, -inf  ;;  %v816_v57 = vsel %vm800_vm1, %v3386_v42, 128  ;;  %v817_v58 = vsel %vm801_vm2, %v3389_v43, 128  ;;  %v820_v59 = vsel %vm804_vm3, %v3392_v45, 128 }
 0x129   : > { %v821_v60 = vsel %vm805_vm4, %v3395_v46, 128  ;;  %v824_v61 = vsel %vm2783_vm5, %v3398_v47, 128  ;;  %v825_v62 = vsel %vm2783_vm5, %v3401_v48, 128  ;;  %v828_v63 = vsel %vm2783_vm5, %v3404_v49, 128 }
 0x12a   : > { %v829_v0 = vsel %vm2783_vm5, %v3407_v50, 128  ;;  %vm834_vm6 = vcmp.lt.s32.totalorder %v816_v57, %v820_v59  ;;  %vm836_vm7 = vcmp.lt.s32.totalorder %v817_v58, %v821_v60  ;;  %vm798_vm8 = vcmp.eq.f32.partialorder %v745_v17, %v3409_v51 }
 0x12b   : > { %v835_v1 = vsel %vm834_vm6, %v816_v57, %v820_v59  ;;  %v837_v3 = vsel %vm836_vm7, %v817_v58, %v821_v60  ;;  %vm799_vm9 = vcmp.eq.f32.partialorder %v746_v13, %v3409_v51  ;;  %vm802_vm10 = vcmp.eq.f32.partialorder %v749_v20, %v3409_v51 }
 0x12c   : > { %vm842_vm11 = vcmp.lt.s32.totalorder %v835_v1, %v824_v61  ;;  %vm844_vm12 = vcmp.lt.s32.totalorder %v837_v3, %v825_v62  ;;  %vm803_vm13 = vcmp.eq.f32.partialorder %v750_v15, %v3409_v51  ;;  %v814_v4 = vsel %vm798_vm8, %v3383_v39, 128 }
 0x12d   : > { %v843_v5 = vsel %vm842_vm11, %v835_v1, %v824_v61  ;;  %v845_v6 = vsel %vm844_vm12, %v837_v3, %v825_v62  ;;  %v815_v7 = vsel %vm799_vm9, %v3412_v52, 128  ;;  %v818_v9 = vsel %vm802_vm10, %v3415_v53, 128 }
 0x12e   : > { %vm850_vm14 = vcmp.lt.s32.totalorder %v843_v5, %v828_v63  ;;  %vm852_vm15 = vcmp.lt.s32.totalorder %v845_v6, %v829_v0  ;;  %v819_v2 = vsel %vm803_vm13, %v3418_v54, 128  ;;  %v822_v13 = vsel %vm2783_vm5, %v3421_v55, 128 }
 0x12f   : > { %v851_v10 = vsel %vm850_vm14, %v843_v5, %v828_v63  ;;  %v853_v11 = vsel %vm852_vm15, %v845_v6, %v829_v0  ;;  %vm830_vm1 = vcmp.lt.s32.totalorder %v814_v4, %v818_v9  ;;  %vm832_vm2 = vcmp.lt.s32.totalorder %v815_v7, %v819_v2 }
 0x130   : > { %vm856_vm0 = vcmp.lt.s32.totalorder %v851_v10, %v853_v11  ;;  %v823_v14 = vsel %vm2783_vm5, %v3424_v56, 128  ;;  %v831_v15 = vsel %vm830_vm1, %v814_v4, %v818_v9  ;;  %v833_v16 = vsel %vm832_vm2, %v815_v7, %v819_v2  ;;  %v358_v2 = vld [vmem:[%s4145_s2 + $0x8] sm:$0xff] }
 0x131   : > { %v857_v17 = vsel %vm856_vm0, %v851_v10, %v853_v11  ;;  %vm838_vm3 = vcmp.lt.s32.totalorder %v831_v15, %v822_v13  ;;  %vm840_vm4 = vcmp.lt.s32.totalorder %v833_v16, %v823_v14  ;;  %v826_v18 = vsel %vm2783_vm5, %v3460_v12, 128  ;;  %v359_v11 = vld [vmem:[%s4145_s2 + $0x10] sm:$0xff] }
 0x132   : > { %v827_v19 = vsel %vm2783_vm5, %v3463_v8, 128  ;;  %v839_v20 = vsel %vm838_vm3, %v831_v15, %v822_v13  ;;  %v841_v21 = vsel %vm840_vm4, %v833_v16, %v823_v14  ;;  %v3478_v29 = vand.u32 127, %v712_v36 }
 0x133   : > { %vm846_vm6 = vcmp.lt.s32.totalorder %v839_v20, %v826_v18  ;;  %vm848_vm7 = vcmp.lt.s32.totalorder %v841_v21, %v827_v19  ;;  %v2551_v0 = vsub.f32 0.0, %v3409_v51 }
 0x134   : > { %v847_v22 = vsel %vm846_vm6, %v839_v20, %v826_v18  ;;  %v849_v23 = vsel %vm848_vm7, %v841_v21, %v827_v19  ;;  %vm1012_vm12 = vcmp.lt.s32.totalorder %v3478_v29, 64  ;;  %v3167_v20 = vmov 1966171168  }
 0x135   : > { %vm854_vm8 = vcmp.lt.s32.totalorder %v847_v22, %v849_v23  ;;  %v3500_v35 = vsel %vm1012_vm12, 1.0, %v3165_v33  ;;  %v2552_v3 = vmax.f32 %v2551_v0, 0.0  ;;  %v1597_v21 = vunpack.c.l.s4 %v3167_v20 }
 0x136   : > { %v855_v24 = vsel %vm854_vm8, %v847_v22, %v849_v23  ;;  %v3678_v23 = vsub.s32 0, %v3383_v39 }
 0x137   : > { %vm858_vm9 = vcmp.lt.s32.totalorder %v855_v24, %v857_v17  ;;  %v2553_v7 = vmul.f32 %v3500_v35, %v2552_v3  ;;  %v1598_v22 = vunpack.c.0.s8 %v1597_v21 }
 0x138   : > { %v859_v25 = vsel %vm858_vm9, %v855_v24, %v857_v17  ;;  %v3681_v24 = vsub.s32 1, %v3383_v39 }
 0x139   : > { %v860_v26 = vrot.slane %v859_v25, 4 }
 0x13b   : > { %vm861_vm10 = vcmp.lt.s32.totalorder %v859_v25, %v860_v26 }
 0x13c   : > { %v862_v27 = vsel %vm861_vm10, %v859_v25, %v860_v26  ;;  %v3684_v25 = vsub.s32 2, %v3383_v39  ;;  %v3687_v26 = vsub.s32 3, %v3383_v39 }
 0x13d   : > { %v863_v28 = vrot.slane %v862_v27, 2 }
 0x13f   : > { %vm864_vm11 = vcmp.lt.s32.totalorder %v862_v27, %v863_v28 }
 0x140   : > { %v865_v30 = vsel %vm864_vm11, %v862_v27, %v863_v28  ;;  %v3690_v27 = vsub.s32 4, %v3383_v39  ;;  %v3693_v28 = vsub.s32 5, %v3383_v39 }
 0x141   : > { %v866_v31 = vrot.slane %v865_v30, 1 }
 0x143   : > { %vm867_vm5 = vcmp.lt.s32.totalorder %v865_v30, %v866_v31 }
 0x144   : > { %v3484_v32 = vsel %vm867_vm5, %v865_v30, %v866_v31  ;;  %v3696_v30 = vsub.s32 6, %v3383_v39  ;;  %v3699_v31 = vsub.s32 7, %v3383_v39 }
 0x145   : > { %vm870_vm13 = vcmp.eq.s32.totalorder %v3383_v39, %v3484_v32  ;;  %vm871_vm14 = vcmp.eq.s32.totalorder %v3412_v52, %v3484_v32  ;;  %vm872_vm15 = vcmp.eq.s32.totalorder %v3386_v42, %v3484_v32  ;;  %vm873_vm0 = vcmp.eq.s32.totalorder %v3389_v43, %v3484_v32  ;;  %869 = vst [vmem:[%s305_s23] sm:$0x1] %v3484_v32 }
 0x146   : > { %vm2950_vm1 = vmpackc.low %vm871_vm14, %vm870_vm13  ;;  %v2792_v34 = vsel %vm871_vm14, 1.0, %v3165_v33  ;;  %v2791_v36 = vsel %vm870_vm13, 1.0, %v3165_v33  ;;  %vm874_vm2 = vcmp.eq.s32.totalorder %v3415_v53, %v3484_v32  ;;  %vm875_vm4 = vcmp.eq.s32.totalorder %v3418_v54, %v3484_v32 }
 0x147   : > { %2951 = vmatprep.subr.msk.bf16.mxu1 %vm2950_vm1, %v3166_v37  ;;  %v1017_v38 = vmul.f32 %v3500_v35, %v2792_v34  ;;  %v1016_v40 = vmul.f32 %v3500_v35, %v2791_v36  ;;  %vm2954_vm3 = vmpackc.low %vm873_vm0, %vm872_vm15  ;;  %v2795_v41 = vsel %vm874_vm2, 1.0, %v3165_v33  ;;  %v2793_v44 = vsel %vm872_vm15, 1.0, %v3165_v33 }
 0x148   : > { %2953 = vmatpush3.bf16.msk.msra.mxu1 %vm2950_vm1, %v3166_v37  ;;  %vm876_vm6 = vcmp.eq.s32.totalorder %v3392_v45, %v3484_v32  ;;  %v1020_v52 = vmul.f32 %v3500_v35, %v2795_v41  ;;  %vm2958_vm7 = vmpackc.low %vm875_vm4, %vm874_vm2  ;;  %v1018_v57 = vmul.f32 %v3500_v35, %v2793_v44  ;;  %vm877_vm8 = vcmp.eq.s32.totalorder %v3395_v46, %v3484_v32 }
 0x149   : > { %1034 = vadd.xlane.f32.xlu1 %v1017_v38  ;;  %2955 = vmatprep.subr.msk.bf16.mxu1 %vm2954_vm3, %v3166_v37  ;;  %v2797_v42 = vsel %vm876_vm6, 1.0, %v3165_v33  ;;  %v2794_v53 = vsel %vm873_vm0, 1.0, %v3165_v33  ;;  %vm878_vm9 = vcmp.eq.s32.totalorder %v3421_v55, %v3484_v32  ;;  %vm2962_vm10 = vmpackc.low %vm877_vm8, %vm876_vm6  ;;  %vm879_vm11 = vcmp.eq.s32.totalorder %v3424_v56, %v3484_v32 }
 0x14a   : > { %1032 = vadd.xlane.f32.xlu0 %v1016_v40  ;;  %v1022_v58 = vmul.f32 %v3500_v35, %v2797_v42  ;;  %v1019_v59 = vmul.f32 %v3500_v35, %v2794_v53  ;;  %v2799_v43 = vsel %vm878_vm9, 1.0, %v3165_v33  ;;  %v2796_v45 = vsel %vm875_vm4, 1.0, %v3165_v33  ;;  %vm2966_vm12 = vmpackc.low %vm879_vm11, %vm878_vm9 }
 0x14b   : > { %vm880_vm5 = vcmp.eq.s32.totalorder %v3398_v47, %v3484_v32  ;;  %v1024_v60 = vmul.f32 %v3500_v35, %v2799_v43  ;;  %v1021_v61 = vmul.f32 %v3500_v35, %v2796_v45  ;;  %vm881_vm13 = vcmp.eq.s32.totalorder %v3401_v48, %v3484_v32 }
 0x14c   : > { %2957 = vmatpush3.bf16.msk.msra.mxu1 %vm2954_vm3, %v3166_v37  ;;  %v2801_v54 = vsel %vm880_vm5, 1.0, %v3165_v33  ;;  %v2798_v55 = vsel %vm877_vm8, 1.0, %v3165_v33  ;;  %vm882_vm14 = vcmp.eq.s32.totalorder %v3460_v12, %v3484_v32  ;;  %vm2970_vm15 = vmpackc.low %vm881_vm13, %vm880_vm5  ;;  %vm883_vm0 = vcmp.eq.s32.totalorder %v3463_v8, %v3484_v32  ;;  %v360_v8 = vld [vmem:[%s4145_s2 + $0x18] sm:$0xff]  ;;  %s2570_s2 = scalar_lea.sflag [#allocation3], %s3481_s22 }
 0x14d   : > { %1040 = vadd.xlane.f32.xlu1 %v1020_v52  ;;  %2959 = vmatprep.subr.msk.bf16.mxu1 %vm2958_vm7, %v3166_v37  ;;  %v1026_v62 = vmul.f32 %v3500_v35, %v2801_v54  ;;  %v1023_v63 = vmul.f32 %v3500_v35, %v2798_v55  ;;  %v2803_v46 = vsel %vm882_vm14, 1.0, %v3165_v33  ;;  %v2800_v47 = vsel %vm879_vm11, 1.0, %v3165_v33  ;;  %vm2974_vm2 = vmpackc.low %vm883_vm0, %vm882_vm14 }
 0x14e   : > { %1036 = vadd.xlane.f32.xlu0 %v1018_v57  ;;  %vm884_vm1 = vcmp.eq.s32.totalorder %v3404_v49, %v3484_v32  ;;  %v1028_v1 = vmul.f32 %v3500_v35, %v2803_v46  ;;  %v1025_v51 = vmul.f32 %v3500_v35, %v2800_v47  ;;  %vm885_vm3 = vcmp.eq.s32.totalorder %v3407_v50, %v3484_v32  ;;  %v2894_v50 = vpop.f32.mrb[8].mxu0 }
 0x14f   : > { %v2805_v56 = vsel %vm884_vm1, 1.0, %v3165_v33  ;;  %v2802_v4 = vsel %vm881_vm13, 1.0, %v3165_v33  ;;  %vm2978_vm4 = vmpackc.low %vm885_vm3, %vm884_vm1  ;;  %vm2554_vm6 = vcmask 1040384   ;;  %v2804_v48 = vsel %vm883_vm0, 1.0, %v3165_v33  ;;  %v545_v13 = vpop.f32.mrb[9].mxu0 }
 0x150   : > { %2961 = vmatpush3.bf16.msk.msra.mxu1 %vm2958_vm7, %v3166_v37  ;;  %v1030_v5 = vmul.f32 %v3500_v35, %v2805_v56  ;;  %v1027_v6 = vmul.f32 %v3500_v35, %v2802_v4  ;;  %v2555_v49 = vsel %vm2554_vm6, %v2553_v7, 0.0  ;;  %v1029_v9 = vmul.f32 %v3500_v35, %v2804_v48  ;;  %v2897_v14 = vpop.f32.mrb[10].mxu0 }
 0x151   : > { %1044 = vadd.xlane.f32.xlu1 %v1022_v58  ;;  %2963 = vmatprep.subr.msk.bf16.mxu1 %vm2962_vm10, %v3166_v37  ;;  %v2806_v10 = vsel %vm885_vm3, 1.0, %v3165_v33  ;;  %vm335_vm7 = vcmask 0   ;;  %v555_v15 = vpop.f32.mrb[11].mxu0  ;;  %v3702_v34 = vsub.s32 %v1598_v22, %v3383_v39 }
 0x152   : > { %1038 = vadd.xlane.f32.xlu0 %v1019_v59  ;;  %v1031_v12 = vmul.f32 %v3500_v35, %v2806_v10  ;;  %336 = vst.msk [vmem:[%s3672_s20] sm:$0x1] %vm335_vm7, %v3165_v33  ;;  %v2900_v16 = vpop.f32.mrb[12].mxu0 }
 0x153   : > { %v565_v17 = vpop.f32.mrb[13].mxu0 }
 0x154   : > { %2965 = vmatpush3.bf16.msk.msra.mxu1 %vm2962_vm10, %v3166_v37  ;;  %v2903_v18 = vpop.f32.mrb[14].mxu0 }
 0x155   : > { %1048 = vadd.xlane.f32.xlu1 %v1024_v60  ;;  %2967 = vmatprep.subr.msk.bf16.mxu1 %vm2966_vm12, %v3166_v37  ;;  %v575_v19 = vpop.f32.mrb[15].mxu0 }
 0x156   : > { %1042 = vadd.xlane.f32.xlu0 %v1021_v61 }
 0x158   : > { %2969 = vmatpush3.bf16.msk.msra.mxu1 %vm2966_vm12, %v3166_v37 }
 0x159   : > { %1052 = vadd.xlane.f32.xlu1 %v1026_v62  ;;  %2971 = vmatprep.subr.msk.bf16.mxu1 %vm2970_vm15, %v3166_v37 }
 0x15a   : > { %1046 = vadd.xlane.f32.xlu0 %v1023_v63 }
 0x15c   : > { %2973 = vmatpush3.bf16.msk.msra.mxu1 %vm2970_vm15, %v3166_v37 }
 0x15d   : > { %1056 = vadd.xlane.f32.xlu1 %v1028_v1  ;;  %2975 = vmatprep.subr.msk.bf16.mxu1 %vm2974_vm2, %v3166_v37 }
 0x15e   : > { %1050 = vadd.xlane.f32.xlu0 %v1025_v51 }
 0x160   : > { %2977 = vmatpush3.bf16.msk.msra.mxu1 %vm2974_vm2, %v3166_v37 }
 0x161   : > { %1060 = vadd.xlane.f32.xlu1 %v1030_v5  ;;  %2979 = vmatprep.subr.msk.bf16.mxu1 %vm2978_vm4, %v3166_v37 }
 0x162   : > { %1054 = vadd.xlane.f32.xlu0 %v1027_v6 }
 0x164   : > { %2981 = vmatpush3.bf16.msk.msra.mxu1 %vm2978_vm4, %v3166_v37 }
 0x165   : > { %2556 = vadd.xlane.f32.xlu1 %v2555_v49 }
 0x166   : > { %1058 = vadd.xlane.f32.xlu0 %v1029_v9 }
 0x167   : > { %2937 = vmatmul.mubr.f32.vlgmr.msra.gmra.mrb[0].mxu1 %v358_v2 }
 0x168   : > { %2939 = vmatprep.mubr.f32.mxu1 %v359_v11 }
 0x16a   : > { %1062 = vadd.xlane.f32.xlu0 %v1031_v12 }
 0x16b   : > { %2940 = vmatmul.mubr.f32.gmra.mrb[2].mxu1 %v360_v8 }
 0x1d6   : > { %v1035_v32 = vpop.xlane.xlu1 %1034 }
 0x1d7   : > { %v1033_v35 = vpop.xlane.xlu0 %1032  ;;  %v1115_v36 = vrot.slane %v1035_v32, %v3678_v23  ;;  %v1119_v37 = vrot.slane %v1035_v32, %v3681_v24  ;;  %v1123_v38 = vrot.slane %v1035_v32, %v3684_v25  ;;  %v1127_v40 = vrot.slane %v1035_v32, %v3687_v26 }
 0x1d8   : > { %v1131_v41 = vrot.slane %v1035_v32, %v3690_v27  ;;  %v1135_v44 = vrot.slane %v1035_v32, %v3693_v28  ;;  %v1139_v52 = vrot.slane %v1035_v32, %v3696_v30  ;;  %v1143_v57 = vrot.slane %v1035_v32, %v3699_v31 }
 0x1d9   : > { %v1641_v42 = vcombine.low %v1115_v36, %v1119_v37  ;;  %v1642_v53 = vcombine.low %v1123_v38, %v1127_v40  ;;  %v1083_v58 = vrot.slane %v1033_v35, %v3678_v23  ;;  %v1087_v59 = vrot.slane %v1033_v35, %v3681_v24 }
 0x1da   : > { %v3714_v43 = vpop.xlane.xlu1 %1040  ;;  %v1643_v45 = vcombine.low %v1131_v41, %v1135_v44  ;;  %v1644_v60 = vcombine.low %v1139_v52, %v1143_v57  ;;  %v1091_v61 = vrot.slane %v1033_v35, %v3684_v25  ;;  %v1095_v54 = vrot.slane %v1033_v35, %v3687_v26 }
 0x1db   : > { %v1037_v55 = vpop.xlane.xlu0 %1036  ;;  %v1651_v62 = vrot.slane %v1641_v42, %v3702_v34  ;;  %v1658_v63 = vrot.slane %v1642_v53, %v3702_v34  ;;  %v1099_v46 = vrot.slane %v1033_v35, %v3690_v27  ;;  %v1103_v0 = vrot.slane %v1033_v35, %v3693_v28 }
 0x1dc   : > { %v1665_v47 = vrot.slane %v1643_v45, %v3702_v34  ;;  %v1672_v1 = vrot.slane %v1644_v60, %v3702_v34  ;;  %v1107_v51 = vrot.slane %v1033_v35, %v3696_v30  ;;  %v1111_v56 = vrot.slane %v1033_v35, %v3699_v31 }
 0x1dd   : > { %v1673_v3 = vcombine.low %v1651_v62, %v1658_v63  ;;  %v1592_v4 = vcombine.low %v1083_v58, %v1087_v59  ;;  %v1593_v5 = vcombine.low %v1091_v61, %v1095_v54  ;;  %v1594_v6 = vcombine.low %v1099_v46, %v1103_v0 }
 0x1de   : > { %v3726_v7 = vpop.xlane.xlu1 %1044  ;;  %v1674_v48 = vcombine.low %v1665_v47, %v1672_v1  ;;  %v1595_v49 = vcombine.low %v1107_v51, %v1111_v56  ;;  %v1147_v9 = vrot.slane %v1037_v55, %v3678_v23  ;;  %v1151_v2 = vrot.slane %v1037_v55, %v3681_v24 }
 0x1df   : > { %v1681_v10 = vrot.slane %v1673_v3, %v3702_v34  ;;  %v1602_v11 = vrot.slane %v1592_v4, %v3702_v34  ;;  %v1609_v12 = vrot.slane %v1593_v5, %v3702_v34  ;;  %v1616_v8 = vrot.slane %v1594_v6, %v3702_v34  ;;  %v1039_v42 = vpop.xlane.xlu0 %1038 }
 0x1e0   : > { %v1688_v50 = vrot.slane %v1674_v48, %v3702_v34  ;;  %v1623_v13 = vrot.slane %v1595_v49, %v3702_v34  ;;  %v1155_v14 = vrot.slane %v1037_v55, %v3684_v25  ;;  %v1159_v15 = vrot.slane %v1037_v55, %v3687_v26 }
 0x1e1   : > { %v1624_v16 = vcombine.low %v1602_v11, %v1609_v12  ;;  %v1163_v17 = vrot.slane %v1037_v55, %v3690_v27  ;;  %v1167_v18 = vrot.slane %v1037_v55, %v3693_v28  ;;  %v1171_v19 = vrot.slane %v1037_v55, %v3696_v30 }
 0x1e2   : > { %v3741_v20 = vpop.xlane.xlu1 %1048  ;;  %v1689_v21 = vcombine.low %v1681_v10, %v1688_v50  ;;  %v1625_v22 = vcombine.low %v1616_v8, %v1623_v13  ;;  %v1175_v32 = vrot.slane %v1037_v55, %v3699_v31  ;;  %v1690_v35 = vcombine.low %v1147_v9, %v1151_v2 }
 0x1e3   : > { %v1632_v36 = vrot.slane %v1624_v16, %v3702_v34  ;;  %v1691_v37 = vcombine.low %v1155_v14, %v1159_v15  ;;  %v1692_v38 = vcombine.low %v1163_v17, %v1167_v18  ;;  %v1211_v40 = vrot.slane %v3714_v43, %v3678_v23 }
 0x1e4   : > { %2380 = vperm.xlu1 %3051, %v1689_v21   ;;  %v1639_v41 = vrot.slane %v1625_v22, %v3702_v34  ;;  %v1693_v44 = vcombine.low %v1171_v19, %v1175_v32  ;;  %v1700_v52 = vrot.slane %v1690_v35, %v3702_v34  ;;  %v1215_v57 = vrot.slane %v3714_v43, %v3681_v24 }
 0x1e5   : > { %v1707_v53 = vrot.slane %v1691_v37, %v3702_v34  ;;  %v1714_v58 = vrot.slane %v1692_v38, %v3702_v34  ;;  %v1219_v59 = vrot.slane %v3714_v43, %v3684_v25  ;;  %v1223_v45 = vrot.slane %v3714_v43, %v3687_v26 }
 0x1e6   : > { %v1640_v60 = vcombine.low %v1632_v36, %v1639_v41  ;;  %v3757_v61 = vpop.xlane.xlu1 %1052  ;;  %v1721_v54 = vrot.slane %v1693_v44, %v3702_v34  ;;  %v1227_v55 = vrot.slane %v3714_v43, %v3690_v27  ;;  %v1231_v62 = vrot.slane %v3714_v43, %v3693_v28 }
 0x1e7   : > { %v1722_v63 = vcombine.low %v1700_v52, %v1707_v53  ;;  %v1235_v46 = vrot.slane %v3714_v43, %v3696_v30  ;;  %v1239_v0 = vrot.slane %v3714_v43, %v3699_v31  ;;  %v1788_v47 = vcombine.low %v1211_v40, %v1215_v57  ;;  %v1043_v52 = vpop.xlane.xlu0 %1042 }
 0x1e8   : > { %2377 = vperm.xlu0 %3050, %v1640_v60   ;;  %v1723_v1 = vcombine.low %v1714_v58, %v1721_v54  ;;  %v1789_v51 = vcombine.low %v1219_v59, %v1223_v45  ;;  %v1790_v56 = vcombine.low %v1227_v55, %v1231_v62  ;;  %v1179_v3 = vrot.slane %v1039_v42, %v3678_v23 }
 0x1e9   : > { %v1730_v4 = vrot.slane %v1722_v63, %v3702_v34  ;;  %v1791_v5 = vcombine.low %v1235_v46, %v1239_v0  ;;  %v1798_v6 = vrot.slane %v1788_v47, %v3702_v34  ;;  %v1183_v48 = vrot.slane %v1039_v42, %v3681_v24 }
 0x1ea   : > { %v1737_v49 = vrot.slane %v1723_v1, %v3702_v34  ;;  %v3773_v9 = vpop.xlane.xlu1 %1056  ;;  %v1805_v43 = vrot.slane %v1789_v51, %v3702_v34  ;;  %v1812_v2 = vrot.slane %v1790_v56, %v3702_v34  ;;  %v1187_v10 = vrot.slane %v1039_v42, %v3684_v25 }
 0x1eb   : > { %v1819_v11 = vrot.slane %v1791_v5, %v3702_v34  ;;  %v1191_v12 = vrot.slane %v1039_v42, %v3687_v26  ;;  %v1195_v8 = vrot.slane %v1039_v42, %v3690_v27  ;;  %v1199_v50 = vrot.slane %v1039_v42, %v3693_v28 }
 0x1ec   : > { %v1738_v13 = vcombine.low %v1730_v4, %v1737_v49  ;;  %v1820_v14 = vcombine.low %v1798_v6, %v1805_v43  ;;  %v1203_v15 = vrot.slane %v1039_v42, %v3696_v30  ;;  %v1207_v16 = vrot.slane %v1039_v42, %v3699_v31 }
 0x1ed   : > { %v1821_v17 = vcombine.low %v1812_v2, %v1819_v11  ;;  %v1739_v18 = vcombine.low %v1179_v3, %v1183_v48  ;;  %v1740_v19 = vcombine.low %v1187_v10, %v1191_v12  ;;  %v1741_v21 = vcombine.low %v1195_v8, %v1199_v50 }
 0x1ee   : > { %2383 = vperm.xlu1 %3051, %v1738_v13   ;;  %v1828_v22 = vrot.slane %v1820_v14, %v3702_v34  ;;  %v1742_v32 = vcombine.low %v1203_v15, %v1207_v16  ;;  %v1275_v35 = vrot.slane %v3726_v7, %v3678_v23  ;;  %v1279_v36 = vrot.slane %v3726_v7, %v3681_v24  ;;  %v3793_v44 = vpop.xlane.xlu1 %1060 }
 0x1ef   : > { %v1835_v37 = vrot.slane %v1821_v17, %v3702_v34  ;;  %v1749_v38 = vrot.slane %v1739_v18, %v3702_v34  ;;  %v1756_v40 = vrot.slane %v1740_v19, %v3702_v34  ;;  %v1763_v41 = vrot.slane %v1741_v21, %v3702_v34 }
 0x1f0   : > { %v1770_v57 = vrot.slane %v1742_v32, %v3702_v34  ;;  %v1283_v42 = vrot.slane %v3726_v7, %v3684_v25  ;;  %v1287_v53 = vrot.slane %v3726_v7, %v3687_v26  ;;  %v1291_v58 = vrot.slane %v3726_v7, %v3690_v27 }
 0x1f1   : > { %v1836_v59 = vcombine.low %v1828_v22, %v1835_v37  ;;  %v1771_v45 = vcombine.low %v1749_v38, %v1756_v40  ;;  %v1295_v60 = vrot.slane %v3726_v7, %v3693_v28  ;;  %v1299_v54 = vrot.slane %v3726_v7, %v3696_v30  ;;  %v1047_v40 = vpop.xlane.xlu0 %1046 }
 0x1f2   : > { %v1772_v55 = vcombine.low %v1763_v41, %v1770_v57  ;;  %v1303_v62 = vrot.slane %v3726_v7, %v3699_v31  ;;  %v1886_v63 = vcombine.low %v1275_v35, %v1279_v36  ;;  %v1887_v46 = vcombine.low %v1283_v42, %v1287_v53  ;;  %v2557_v43 = vpop.xlane.xlu1 %2556 }
 0x1f3   : > { %2389 = vperm.xlu1 %3051, %v1836_v59   ;;  %v1779_v0 = vrot.slane %v1771_v45, %v3702_v34  ;;  %v1888_v47 = vcombine.low %v1291_v58, %v1295_v60  ;;  %v1243_v1 = vrot.slane %v1043_v52, %v3678_v23  ;;  %v1247_v51 = vrot.slane %v1043_v52, %v3681_v24 }
 0x1f4   : > { %v1786_v56 = vrot.slane %v1772_v55, %v3702_v34  ;;  %v1889_v3 = vcombine.low %v1299_v54, %v1303_v62  ;;  %v1896_v4 = vrot.slane %v1886_v63, %v3702_v34  ;;  %v1903_v5 = vrot.slane %v1887_v46, %v3702_v34 }
 0x1f5   : > { %v1910_v6 = vrot.slane %v1888_v47, %v3702_v34  ;;  %v1251_v7 = vrot.slane %v1043_v52, %v3684_v25  ;;  %v1255_v48 = vrot.slane %v1043_v52, %v3687_v26  ;;  %v1259_v49 = vrot.slane %v1043_v52, %v3690_v27 }
 0x1f6   : > { %v1787_v2 = vcombine.low %v1779_v0, %v1786_v56  ;;  %v1917_v10 = vrot.slane %v1889_v3, %v3702_v34  ;;  %v1918_v11 = vcombine.low %v1896_v4, %v1903_v5  ;;  %v1263_v12 = vrot.slane %v1043_v52, %v3693_v28 }
 0x1f7   : > { %v1267_v8 = vrot.slane %v1043_v52, %v3696_v30  ;;  %v1271_v50 = vrot.slane %v1043_v52, %v3699_v31  ;;  %v1837_v13 = vcombine.low %v1243_v1, %v1247_v51  ;;  %v1838_v14 = vcombine.low %v1251_v7, %v1255_v48 }
 0x1f8   : > { %2386 = vperm.xlu0 %3050, %v1787_v2   ;;  %v1919_v15 = vcombine.low %v1910_v6, %v1917_v10  ;;  %v1926_v16 = vrot.slane %v1918_v11, %v3702_v34  ;;  %v1839_v17 = vcombine.low %v1259_v49, %v1263_v12  ;;  %v2558_v18 = vrot.slane %v2557_v43, 4 }
 0x1f9   : > { %v1840_v19 = vcombine.low %v1267_v8, %v1271_v50  ;;  %v1847_v21 = vrot.slane %v1837_v13, %v3702_v34  ;;  %v1854_v22 = vrot.slane %v1838_v14, %v3702_v34  ;;  %v1339_v32 = vrot.slane %v3741_v20, %v3678_v23 }
 0x1fa   : > { %v1933_v35 = vrot.slane %v1919_v15, %v3702_v34  ;;  %v1861_v36 = vrot.slane %v1839_v17, %v3702_v34  ;;  %v3829_v37 = vadd.f32 %v2558_v18, %v2557_v43  ;;  %v1343_v38 = vrot.slane %v3741_v20, %v3681_v24 }
 0x1fb   : > { %v1868_v41 = vrot.slane %v1840_v19, %v3702_v34  ;;  %v1869_v52 = vcombine.low %v1847_v21, %v1854_v22  ;;  %v1347_v57 = vrot.slane %v3741_v20, %v3684_v25  ;;  %v1351_v42 = vrot.slane %v3741_v20, %v3687_v26 }
 0x1fc   : > { %v1934_v53 = vcombine.low %v1926_v16, %v1933_v35  ;;  %v2560_v58 = vrot.slane %v3829_v37, 2  ;;  %v1355_v59 = vrot.slane %v3741_v20, %v3690_v27  ;;  %v1359_v45 = vrot.slane %v3741_v20, %v3693_v28  ;;  %v1051_v35 = vpop.xlane.xlu0 %1050 }
 0x1fd   : > { %v1870_v60 = vcombine.low %v1861_v36, %v1868_v41  ;;  %v1877_v54 = vrot.slane %v1869_v52, %v3702_v34  ;;  %v1363_v55 = vrot.slane %v3741_v20, %v3696_v30  ;;  %v1367_v62 = vrot.slane %v3741_v20, %v3699_v31 }
 0x1fe   : > { %2395 = vperm.xlu1 %3051, %v1934_v53   ;;  %v1984_v63 = vcombine.low %v1339_v32, %v1343_v38  ;;  %v1985_v46 = vcombine.low %v1347_v57, %v1351_v42  ;;  %v1986_v0 = vcombine.low %v1355_v59, %v1359_v45  ;;  %v1307_v47 = vrot.slane %v1047_v40, %v3678_v23 }
 0x1ff   : > { %v1884_v1 = vrot.slane %v1870_v60, %v3702_v34  ;;  %v1987_v51 = vcombine.low %v1363_v55, %v1367_v62  ;;  %v1311_v56 = vrot.slane %v1047_v40, %v3681_v24  ;;  %v1315_v3 = vrot.slane %v1047_v40, %v3684_v25 }
 0x200   : > { %v1994_v4 = vrot.slane %v1984_v63, %v3702_v34  ;;  %v2001_v5 = vrot.slane %v1985_v46, %v3702_v34  ;;  %v2008_v6 = vrot.slane %v1986_v0, %v3702_v34  ;;  %v1319_v20 = vrot.slane %v1047_v40, %v3687_v26 }
 0x201   : > { %v1885_v7 = vcombine.low %v1877_v54, %v1884_v1  ;;  %v2015_v48 = vrot.slane %v1987_v51, %v3702_v34  ;;  %v1323_v49 = vrot.slane %v1047_v40, %v3690_v27  ;;  %v1327_v43 = vrot.slane %v1047_v40, %v3693_v28 }
 0x202   : > { %v2016_v2 = vcombine.low %v1994_v4, %v2001_v5  ;;  %v1331_v10 = vrot.slane %v1047_v40, %v3696_v30  ;;  %v1335_v11 = vrot.slane %v1047_v40, %v3699_v31  ;;  %v1935_v12 = vcombine.low %v1307_v47, %v1311_v56 }
 0x203   : > { %2392 = vperm.xlu0 %3050, %v1885_v7   ;;  %v2017_v8 = vcombine.low %v2008_v6, %v2015_v48  ;;  %v1936_v50 = vcombine.low %v1315_v3, %v1319_v20  ;;  %v1937_v13 = vcombine.low %v1323_v49, %v1327_v43  ;;  %v1403_v14 = vrot.slane %v3757_v61, %v3678_v23 }
 0x204   : > { %v2024_v15 = vrot.slane %v2016_v2, %v3702_v34  ;;  %v1938_v16 = vcombine.low %v1331_v10, %v1335_v11  ;;  %v1945_v17 = vrot.slane %v1935_v12, %v3702_v34  ;;  %v1407_v18 = vrot.slane %v3757_v61, %v3681_v24 }
 0x205   : > { %v2031_v19 = vrot.slane %v2017_v8, %v3702_v34  ;;  %v1952_v21 = vrot.slane %v1936_v50, %v3702_v34  ;;  %v1959_v22 = vrot.slane %v1937_v13, %v3702_v34  ;;  %v1411_v32 = vrot.slane %v3757_v61, %v3684_v25 }
 0x206   : > { %v1966_v36 = vrot.slane %v1938_v16, %v3702_v34  ;;  %v1415_v38 = vrot.slane %v3757_v61, %v3687_v26  ;;  %v1419_v40 = vrot.slane %v3757_v61, %v3690_v27  ;;  %v1423_v41 = vrot.slane %v3757_v61, %v3693_v28  ;;  %v1055_v16 = vpop.xlane.xlu0 %1054 }
 0x207   : > { %v2032_v52 = vcombine.low %v2024_v15, %v2031_v19  ;;  %v1967_v57 = vcombine.low %v1945_v17, %v1952_v21  ;;  %v1427_v42 = vrot.slane %v3757_v61, %v3696_v30  ;;  %v1431_v53 = vrot.slane %v3757_v61, %v3699_v31 }
 0x208   : > { %v1968_v59 = vcombine.low %v1959_v22, %v1966_v36  ;;  %v2082_v45 = vcombine.low %v1403_v14, %v1407_v18  ;;  %v2083_v60 = vcombine.low %v1411_v32, %v1415_v38  ;;  %v2084_v54 = vcombine.low %v1419_v40, %v1423_v41 }
 0x209   : > { %2401 = vperm.xlu1 %3051, %v2032_v52   ;;  %v1975_v55 = vrot.slane %v1967_v57, %v3702_v34  ;;  %v2085_v62 = vcombine.low %v1427_v42, %v1431_v53  ;;  %v1371_v63 = vrot.slane %v1051_v35, %v3678_v23  ;;  %v1375_v46 = vrot.slane %v1051_v35, %v3681_v24 }
 0x20a   : > { %v1982_v0 = vrot.slane %v1968_v59, %v3702_v34  ;;  %v2092_v47 = vrot.slane %v2082_v45, %v3702_v34  ;;  %v2099_v1 = vrot.slane %v2083_v60, %v3702_v34  ;;  %v2106_v61 = vrot.slane %v2084_v54, %v3702_v34 }
 0x20b   : > { %v2113_v51 = vrot.slane %v2085_v62, %v3702_v34  ;;  %v1379_v56 = vrot.slane %v1051_v35, %v3684_v25  ;;  %v1383_v3 = vrot.slane %v1051_v35, %v3687_v26  ;;  %v1387_v4 = vrot.slane %v1051_v35, %v3690_v27 }
 0x20c   : > { %v1983_v5 = vcombine.low %v1975_v55, %v1982_v0  ;;  %v2114_v6 = vcombine.low %v2092_v47, %v2099_v1  ;;  %v1391_v20 = vrot.slane %v1051_v35, %v3693_v28  ;;  %v1395_v7 = vrot.slane %v1051_v35, %v3696_v30 }
 0x20d   : > { %v2115_v48 = vcombine.low %v2106_v61, %v2113_v51  ;;  %v1399_v49 = vrot.slane %v1051_v35, %v3699_v31  ;;  %v2033_v43 = vcombine.low %v1371_v63, %v1375_v46  ;;  %v2034_v2 = vcombine.low %v1379_v56, %v1383_v3 }
 0x20e   : > { %2398 = vperm.xlu0 %3050, %v1983_v5   ;;  %v2122_v10 = vrot.slane %v2114_v6, %v3702_v34  ;;  %v2035_v11 = vcombine.low %v1387_v4, %v1391_v20  ;;  %v1467_v12 = vrot.slane %v3773_v9, %v3678_v23  ;;  %v1471_v8 = vrot.slane %v3773_v9, %v3681_v24 }
 0x20f   : > { %v2129_v50 = vrot.slane %v2115_v48, %v3702_v34  ;;  %v2036_v13 = vcombine.low %v1395_v7, %v1399_v49  ;;  %v2043_v14 = vrot.slane %v2033_v43, %v3702_v34  ;;  %v2050_v15 = vrot.slane %v2034_v2, %v3702_v34 }
 0x210   : > { %v2057_v17 = vrot.slane %v2035_v11, %v3702_v34  ;;  %v1475_v18 = vrot.slane %v3773_v9, %v3684_v25  ;;  %v1479_v19 = vrot.slane %v3773_v9, %v3687_v26  ;;  %v1483_v21 = vrot.slane %v3773_v9, %v3690_v27 }
 0x211   : > { %v2130_v22 = vcombine.low %v2122_v10, %v2129_v50  ;;  %v2064_v32 = vrot.slane %v2036_v13, %v3702_v34  ;;  %v2065_v35 = vcombine.low %v2043_v14, %v2050_v15  ;;  %v1487_v36 = vrot.slane %v3773_v9, %v3693_v28  ;;  %v1059_v10 = vpop.xlane.xlu0 %1058 }
 0x212   : > { %v1491_v38 = vrot.slane %v3773_v9, %v3696_v30  ;;  %v1495_v40 = vrot.slane %v3773_v9, %v3699_v31  ;;  %v2180_v41 = vcombine.low %v1467_v12, %v1471_v8  ;;  %v2181_v52 = vcombine.low %v1475_v18, %v1479_v19 }
 0x213   : > { %2407 = vperm.xlu1 %3051, %v2130_v22   ;;  %v2066_v57 = vcombine.low %v2057_v17, %v2064_v32  ;;  %v2073_v42 = vrot.slane %v2065_v35, %v3702_v34  ;;  %v2182_v53 = vcombine.low %v1483_v21, %v1487_v36  ;;  %v1435_v59 = vrot.slane %v1055_v16, %v3678_v23 }
 0x214   : > { %v2183_v45 = vcombine.low %v1491_v38, %v1495_v40  ;;  %v2190_v60 = vrot.slane %v2180_v41, %v3702_v34  ;;  %v2197_v54 = vrot.slane %v2181_v52, %v3702_v34  ;;  %v1439_v55 = vrot.slane %v1055_v16, %v3681_v24 }
 0x215   : > { %v2080_v62 = vrot.slane %v2066_v57, %v3702_v34  ;;  %v2204_v9 = vrot.slane %v2182_v53, %v3702_v34  ;;  %v1443_v63 = vrot.slane %v1055_v16, %v3684_v25  ;;  %v1447_v46 = vrot.slane %v1055_v16, %v3687_v26  ;;  %v1063_v53 = vpop.xlane.xlu0 %1062 }
 0x216   : > { %v2211_v0 = vrot.slane %v2183_v45, %v3702_v34  ;;  %v2212_v47 = vcombine.low %v2190_v60, %v2197_v54  ;;  %v1451_v1 = vrot.slane %v1055_v16, %v3690_v27  ;;  %v1455_v61 = vrot.slane %v1055_v16, %v3693_v28 }
 0x217   : > { %v2081_v51 = vcombine.low %v2073_v42, %v2080_v62  ;;  %v1459_v56 = vrot.slane %v1055_v16, %v3696_v30  ;;  %v1463_v3 = vrot.slane %v1055_v16, %v3699_v31  ;;  %v2131_v4 = vcombine.low %v1435_v59, %v1439_v55 }
 0x218   : > { %v2213_v5 = vcombine.low %v2204_v9, %v2211_v0  ;;  %v2220_v6 = vrot.slane %v2212_v47, %v3702_v34  ;;  %v2132_v20 = vcombine.low %v1443_v63, %v1447_v46  ;;  %v2133_v7 = vcombine.low %v1451_v1, %v1455_v61 }
 0x219   : > { %2404 = vperm.xlu0 %3050, %v2081_v51   ;;  %v2134_v48 = vcombine.low %v1459_v56, %v1463_v3  ;;  %v2141_v49 = vrot.slane %v2131_v4, %v3702_v34  ;;  %v2561_v43 = vadd.f32 %v2560_v58, %v3829_v37  ;;  %v1531_v2 = vrot.slane %v3793_v44, %v3678_v23 }
 0x21a   : > { %v2227_v11 = vrot.slane %v2213_v5, %v3702_v34  ;;  %v2148_v12 = vrot.slane %v2132_v20, %v3702_v34  ;;  %v2155_v8 = vrot.slane %v2133_v7, %v3702_v34  ;;  %v1535_v50 = vrot.slane %v3793_v44, %v3681_v24 }
 0x21b   : > { %v2162_v13 = vrot.slane %v2134_v48, %v3702_v34  ;;  %v2562_v14 = vrot.slane %v2561_v43, 1  ;;  %v1539_v15 = vrot.slane %v3793_v44, %v3684_v25  ;;  %v1543_v37 = vrot.slane %v3793_v44, %v3687_v26 }
 0x21c   : > { %v2228_v58 = vcombine.low %v2220_v6, %v2227_v11  ;;  %v2163_v16 = vcombine.low %v2141_v49, %v2148_v12  ;;  %v1547_v17 = vrot.slane %v3793_v44, %v3690_v27  ;;  %v1551_v18 = vrot.slane %v3793_v44, %v3693_v28 }
 0x21d   : > { %v2164_v19 = vcombine.low %v2155_v8, %v2162_v13  ;;  %v2563_v21 = vadd.f32 %v2562_v14, %v2561_v43  ;;  %v1555_v22 = vrot.slane %v3793_v44, %v3696_v30  ;;  %v1559_v32 = vrot.slane %v3793_v44, %v3699_v31 }
 0x21e   : > { %2413 = vperm.xlu1 %3051, %v2228_v58   ;;  %v2171_v35 = vrot.slane %v2163_v16, %v3702_v34  ;;  %v2278_v36 = vcombine.low %v1531_v2, %v1535_v50  ;;  %v2279_v38 = vcombine.low %v1539_v15, %v1543_v37  ;;  %v2280_v40 = vcombine.low %v1547_v17, %v1551_v18 }
 0x21f   : > { %v2178_v41 = vrot.slane %v2164_v19, %v3702_v34  ;;  %2982 = vpush %v2563_v21  ;;  %v2281_v52 = vcombine.low %v1555_v22, %v1559_v32  ;;  %v1499_v57 = vrot.slane %v1059_v10, %v3678_v23  ;;  %v1503_v42 = vrot.slane %v1059_v10, %v3681_v24 }
 0x220   : > { %v2288_v59 = vrot.slane %v2278_v36, %v3702_v34  ;;  %v2295_v45 = vrot.slane %v2279_v38, %v3702_v34  ;;  %v2302_v44 = vrot.slane %v2280_v40, %v3702_v34  ;;  %v1507_v60 = vrot.slane %v1059_v10, %v3684_v25 }
 0x221   : > { %v2179_v54 = vcombine.low %v2171_v35, %v2178_v41  ;;  %v2309_v55 = vrot.slane %v2281_v52, %v3702_v34  ;;  %v1511_v62 = vrot.slane %v1059_v10, %v3687_v26  ;;  %v1515_v9 = vrot.slane %v1059_v10, %v3690_v27 }
 0x222   : > { %v2310_v63 = vcombine.low %v2288_v59, %v2295_v45  ;;  %v1519_v46 = vrot.slane %v1059_v10, %v3693_v28  ;;  %v1523_v0 = vrot.slane %v1059_v10, %v3696_v30  ;;  %v1527_v47 = vrot.slane %v1059_v10, %v3699_v31 }
 0x223   : > { %2410 = vperm.xlu0 %3050, %v2179_v54   ;;  %v2311_v1 = vcombine.low %v2302_v44, %v2309_v55  ;;  %v2229_v61 = vcombine.low %v1499_v57, %v1503_v42  ;;  %v2230_v51 = vcombine.low %v1507_v60, %v1511_v62  ;;  %v1563_v56 = vrot.slane %v1063_v53, %v3678_v23 }
 0x224   : > { %v2318_v3 = vrot.slane %v2310_v63, %v3702_v34  ;;  %v2231_v4 = vcombine.low %v1515_v9, %v1519_v46  ;;  %v2232_v5 = vcombine.low %v1523_v0, %v1527_v47  ;;  %v1567_v6 = vrot.slane %v1063_v53, %v3681_v24 }
 0x225   : > { %v2325_v20 = vrot.slane %v2311_v1, %v3702_v34  ;;  %v2239_v7 = vrot.slane %v2229_v61, %v3702_v34  ;;  %v2246_v48 = vrot.slane %v2230_v51, %v3702_v34  ;;  %v1571_v49 = vrot.slane %v1063_v53, %v3684_v25 }
 0x226   : > { %v2253_v43 = vrot.slane %v2231_v4, %v3702_v34  ;;  %v2260_v2 = vrot.slane %v2232_v5, %v3702_v34  ;;  %v1575_v23 = vrot.slane %v1063_v53, %v3687_v26  ;;  %v1579_v10 = vrot.slane %v1063_v53, %v3690_v27 }
 0x227   : > { %v2326_v11 = vcombine.low %v2318_v3, %v2325_v20  ;;  %v2261_v12 = vcombine.low %v2239_v7, %v2246_v48  ;;  %v1583_v24 = vrot.slane %v1063_v53, %v3693_v28  ;;  %v1587_v8 = vrot.slane %v1063_v53, %v3696_v30 }
 0x228   : > { %v2262_v50 = vcombine.low %v2253_v43, %v2260_v2  ;;  %v1591_v13 = vrot.slane %v1063_v53, %v3699_v31  ;;  %v2327_v14 = vcombine.low %v1563_v56, %v1567_v6  ;;  %v2328_v15 = vcombine.low %v1571_v49, %v1575_v23 }
 0x229   : > { %2419 = vperm.xlu1 %3051, %v2326_v11   ;;  %v2269_v25 = vrot.slane %v2261_v12, %v3702_v34  ;;  %v2329_v37 = vcombine.low %v1579_v10, %v1583_v24 }
 0x22a   : > { %v2276_v26 = vrot.slane %v2262_v50, %v3702_v34  ;;  %v2330_v27 = vcombine.low %v1587_v8, %v1591_v13  ;;  %v2337_v58 = vrot.slane %v2327_v14, %v3702_v34  ;;  %v2344_v28 = vrot.slane %v2328_v15, %v3702_v34 }
 0x22b   : > { %v2351_v30 = vrot.slane %v2329_v37, %v3702_v34 }
 0x22c   : > { %v2277_v16 = vcombine.low %v2269_v25, %v2276_v26  ;;  %v2358_v31 = vrot.slane %v2330_v27, %v3702_v34  ;;  %v2359_v17 = vcombine.low %v2337_v58, %v2344_v28 }
 0x22e   : > { %2416 = vperm.xlu0 %3050, %v2277_v16   ;;  %v2360_v18 = vcombine.low %v2351_v30, %v2358_v31  ;;  %v2367_v19 = vrot.slane %v2359_v17, %v3702_v34 }
 0x230   : > { %v2374_v21 = vrot.slane %v2360_v18, %v3702_v34 }
 0x232   : > { %v2375_v22 = vcombine.low %v2367_v19, %v2374_v21 }
 0x234   : > { %2422 = vperm.xlu0 %3050, %v2375_v22  }
 0x23a   : > { %v2938_v32 = vpop.f32.mrb[0].mxu1 }
 0x23b   : > { %1004 = vst [vmem:[%s299_s12 + $0x8] sm:$0xff] %v2938_v32  ;;  %v984_v35 = vpop.f32.mrb[1].mxu1 }
 0x23c   : > { %1003 = vst [vmem:[%s299_s12] sm:$0xff] %v984_v35 }
 0x23e   : > { %v2941_v33 = vpop.f32.mrb[2].mxu1 }
 0x23f   : > { %1006 = vst [vmem:[%s299_s12 + $0x18] sm:$0xff] %v2941_v33  ;;  %v994_v36 = vpop.f32.mrb[3].mxu1 }
 0x240   : > { %1005 = vst [vmem:[%s299_s12 + $0x10] sm:$0xff] %v994_v36 }
 0x241   : > { %3065 = shalt.err (!%p3062_p5)
}
 0x242   : > { %s3066_s0 = scalar_lea.hbm %s4009_s19, 512  ;;  %s3070_s18 = scalar_lea.hbm %s4132_s4, 1024 }
 0x243   : > { %p3067_p6 = scmp.ne.s32.totalorder %s4009_s19, %s3066_s0  ;;  %p3071_p10 = scmp.lt.u32.totalorder %s4009_s19, %s4132_s4 }
 0x244   : > { %p3072_p11 = scmp.lt.u32.totalorder %s3070_s18, %s3066_s0  ;;  %p3074_p13 = scmp.lt.u32.totalorder %s3066_s0, %s4009_s19 }
 0x245   : > { %p3068_p7 = pnand %p3067_p6, %p3252_p4 }
 0x246   : > { %p3073_p12 = por %p3072_p11, %p3071_p10 }
 0x247   : > { %p3069_p9 = pneg %p3068_p7 }
 0x248   : > { %p3075_p0 = por %p3074_p13, %p3073_p12 }
 0x24a   : > { %p3076_p1 = pnand %p3075_p0, %p3069_p9 }
 0x24c   : > { %3079 = shalt.err (!%p3076_p1)
}
 0x24d   : > { %s3169_s3 = smov 128   ;;  %s3170_s16 = smov 8  }
 0x24e   : > { %2984 = dma.vmem_to_hbm [thread:$0]  (%p3252_p4), %s4004_s15, 512, %s4009_s19, %s2570_s2, %s3169_s3, %s3169_s3, %s3170_s16  }
 0x24f   : > { %s2575_s17 = scalar_lea.sflag [#allocation5], %s3481_s22  ;;  %s3080_s27 = scalar_lea.vmem %s4019_s30, 16 }
 0x250   : > { %p3081_p2 = scmp.ne.s32.totalorder %s4019_s30, %s3080_s27  ;;  %s3171_s0 = smov [#allocation4]  }
 0x251   : > { %s3084_s23 = sshll.u32 %s3171_s0, 4  ;;  %s3085_s23 = int_to_ptr.vmem [resolvable:$false] %s3084_s23 }
 0x252   : > { %p3082_p3 = pnand %p3081_p2, %p3252_p4  ;;  %s3086_s12 = scalar_lea.vmem %s3085_s23, 32 }
 0x253   : > { %p3087_p6 = scmp.lt.s32.totalorder %s4019_s30, %s3085_s23  ;;  %p3088_p7 = scmp.lt.s32.totalorder %s3086_s12, %s3080_s27 }
 0x254   : > { %p3083_p5 = pneg %p3082_p3 }
 0x255   : > { %p3089_p9 = por %p3088_p7, %p3087_p6 }
 0x257   : > { %p3090_p10 = pnand %p3089_p9, %p3083_p5 }
 0x259   : > { %3093 = shalt.err (!%p3090_p10)
}
 0x25a   : > { %s3094_s2 = scalar_lea.hbm %s4017_s1, 16  ;;  %s3098_s19 = scalar_lea.hbm %s4133_s5, 32 }
 0x25b   : > { %p3095_p11 = scmp.ne.s32.totalorder %s4017_s1, %s3094_s2  ;;  %p3099_p0 = scmp.lt.u32.totalorder %s4017_s1, %s4133_s5 }
 0x25c   : > { %p3100_p1 = scmp.lt.u32.totalorder %s3098_s19, %s3094_s2  ;;  %p3102_p3 = scmp.lt.u32.totalorder %s3094_s2, %s4017_s1 }
 0x25d   : > { %p3096_p12 = pnand %p3095_p11, %p3252_p4 }
 0x25e   : > { %p3101_p2 = por %p3100_p1, %p3099_p0 }
 0x25f   : > { %p3097_p13 = pneg %p3096_p12 }
 0x260   : > { %p3103_p5 = por %p3102_p3, %p3101_p2 }
 0x262   : > { %p3104_p6 = pnand %p3103_p5, %p3097_p13 }
 0x264   : > { %3107 = shalt.err (!%p3104_p6)
}
 0x265   : > { %2985 = dma.vmem_to_hbm [thread:$0]  (%p3252_p4), %s4019_s30, 16, %s4017_s1, %s2575_s17   ;;  %v2550_v38 = vld [vmem:[%s3672_s20] sm:$0x1]  ;;  %v2381_v52 = vpop.permute.xlu1 %2380  ;;  %v2428_v59 = vadd.s32 4294967288, %v3478_v29  ;;  %v2435_v44 = vadd.s32 4294967280, %v3478_v29  ;;  %v2442_v60 = vadd.s32 4294967272, %v3478_v29  ;;  %v2426_v55 = vsub.s32 %v3478_v29, %v3383_v39 }
 0x266   : > { %s2983_s10 = spop %2982  ;;  %v2449_v9 = vadd.s32 4294967264, %v3478_v29  ;;  %v2456_v47 = vadd.s32 4294967256, %v3478_v29  ;;  %vm2433_vm8 = vcmask 130112   ;;  %v2463_v3 = vadd.s32 4294967248, %v3478_v29 }
 0x267   : > { %v2565_v40 = vstv %s2983_s10  ;;  %v2378_v42 = vpop.permute.xlu0 %2377  ;;  %v2431_v54 = vsub.s32 %v2428_v59, %v3383_v39  ;;  %v2438_v62 = vsub.s32 %v2435_v44, %v3383_v39  ;;  %v2445_v46 = vsub.s32 %v2442_v60, %v3383_v39 }
 0x268   : > { %v2566_v41 = vadd.f32 %v2565_v40, %v2550_v38  ;;  %v2427_v61 = vrot.slane %v2378_v42, %v2426_v55  ;;  %v2452_v56 = vsub.s32 %v2449_v9, %v3383_v39  ;;  %vm2440_vm9 = vcmask 195712  }
 0x269   : > { %v2432_v1 = vrot.slane %v2381_v52, %v2431_v54  ;;  %v2459_v5 = vsub.s32 %v2456_v47, %v3383_v39  ;;  %v2470_v6 = vadd.s32 4294967240, %v3478_v29  ;;  %vm2447_vm10 = vcmask 261312  }
 0x26a   : > { %2568 = vst.msk [vmem:[%s3672_s20] sm:$0x1] %vm335_vm7, %v2566_v41  ;;  %vm2454_vm11 = vcmask 326912   ;;  %v2466_v2 = vsub.s32 %v2463_v3, %v3383_v39  ;;  %v2477_v23 = vadd.s32 4294967232, %v3478_v29  ;;  %v2484_v24 = vadd.s32 4294967224, %v3478_v29 }
 0x26b   : > { %v2434_v7 = vsel %vm2433_vm8, %v2432_v1, %v2427_v61  ;;  %v2473_v12 = vsub.s32 %v2470_v6, %v3383_v39  ;;  %vm2461_vm5 = vcmask 392512   ;;  %vm2468_vm12 = vcmask 458112   ;;  %v1015_v61 = vld [vmem:[%s3998_s8] sm:$0x1] }
 0x26c   : > { %v2480_v13 = vsub.s32 %v2477_v23, %v3383_v39  ;;  %v2491_v14 = vadd.s32 4294967216, %v3478_v29  ;;  %v2487_v27 = vsub.s32 %v2484_v24, %v3383_v39  ;;  %v2498_v58 = vadd.s32 4294967208, %v3478_v29 }
 0x26d   : > { %v2384_v57 = vpop.permute.xlu1 %2383  ;;  %vm2475_vm13 = vcmask 523712   ;;  %vm2482_vm14 = vcmask 589312   ;;  %v2505_v31 = vadd.s32 4294967200, %v3478_v29  ;;  %v2512_v21 = vadd.s32 4294967192, %v3478_v29 }
 0x26e   : > { %v2439_v51 = vrot.slane %v2384_v57, %v2438_v62  ;;  %v2494_v16 = vsub.s32 %v2491_v14, %v3383_v39  ;;  %v2501_v19 = vsub.s32 %v2498_v58, %v3383_v39  ;;  %vm2489_vm15 = vcmask 654912  }
 0x26f   : > { %v2508_v36 = vsub.s32 %v2505_v31, %v3383_v39  ;;  %v2519_v38 = vadd.s32 4294967184, %v3478_v29  ;;  %vm2496_vm0 = vcmask 720512   ;;  %v2515_v52 = vsub.s32 %v2512_v21, %v3383_v39 }
 0x270   : > { %v2441_v49 = vsel %vm2440_vm9, %v2439_v51, %v2434_v7  ;;  %vm2503_vm1 = vcmask 786112   ;;  %v2526_v57 = vadd.s32 4294967176, %v3478_v29  ;;  %vm2510_vm2 = vcmask 851712  }
 0x271   : > { %v2522_v59 = vsub.s32 %v2519_v38, %v3383_v39  ;;  %vm2517_vm3 = vcmask 917312   ;;  %vm2524_vm4 = vcmask 982912   ;;  %vm2531_vm6 = vcmask 1048512  }
 0x272   : > { %v2390_v45 = vpop.permute.xlu1 %2389  ;;  %v2529_v55 = vsub.s32 %v2526_v57, %v3383_v39 }
 0x273   : > { %v2453_v43 = vrot.slane %v2390_v45, %v2452_v56 }
 0x277   : > { %v2387_v53 = vpop.permute.xlu0 %2386 }
 0x278   : > { %v2446_v4 = vrot.slane %v2387_v53, %v2445_v46 }
 0x27a   : > { %v2448_v10 = vsel %vm2447_vm10, %v2446_v4, %v2441_v49 }
 0x27b   : > { %v2455_v50 = vsel %vm2454_vm11, %v2453_v43, %v2448_v10 }
 0x27d   : > { %v2396_v0 = vpop.permute.xlu1 %2395 }
 0x27e   : > { %v2467_v8 = vrot.slane %v2396_v0, %v2466_v2 }
 0x282   : > { %v2393_v63 = vpop.permute.xlu0 %2392 }
 0x283   : > { %v2460_v11 = vrot.slane %v2393_v63, %v2459_v5 }
 0x285   : > { %v2462_v25 = vsel %vm2461_vm5, %v2460_v11, %v2455_v50 }
 0x286   : > { %v2469_v30 = vsel %vm2468_vm12, %v2467_v8, %v2462_v25 }
 0x288   : > { %v2402_v48 = vpop.permute.xlu1 %2401 }
 0x289   : > { %v2481_v28 = vrot.slane %v2402_v48, %v2480_v13 }
 0x28d   : > { %v2399_v20 = vpop.permute.xlu0 %2398 }
 0x28e   : > { %v2474_v37 = vrot.slane %v2399_v20, %v2473_v12 }
 0x290   : > { %v2476_v17 = vsel %vm2475_vm13, %v2474_v37, %v2469_v30 }
 0x291   : > { %v2483_v33 = vsel %vm2482_vm14, %v2481_v28, %v2476_v17 }
 0x292   : > { %v2408_v26 = vpop.permute.xlu1 %2407 }
 0x293   : > { %v2495_v35 = vrot.slane %v2408_v26, %v2494_v16 }
 0x298   : > { %v2405_v15 = vpop.permute.xlu0 %2404 }
 0x299   : > { %v2488_v18 = vrot.slane %v2405_v15, %v2487_v27 }
 0x29b   : > { %v2490_v40 = vsel %vm2489_vm15, %v2488_v18, %v2483_v33 }
 0x29c   : > { %v2497_v53 = vsel %vm2496_vm0, %v2495_v35, %v2490_v40 }
 0x29d   : > { %v2414_v32 = vpop.permute.xlu1 %2413 }
 0x29e   : > { %v2509_v42 = vrot.slane %v2414_v32, %v2508_v36 }
 0x2a2   : > { %v2411_v22 = vpop.permute.xlu0 %2410 }
 0x2a3   : > { %v2502_v41 = vrot.slane %v2411_v22, %v2501_v19 }
 0x2a5   : > { %v2504_v44 = vsel %vm2503_vm1, %v2502_v41, %v2497_v53 }
 0x2a6   : > { %v2511_v9 = vsel %vm2510_vm2, %v2509_v42, %v2504_v44 }
 0x2a8   : > { %v2420_v60 = vpop.permute.xlu1 %2419 }
 0x2a9   : > { %v2523_v62 = vrot.slane %v2420_v60, %v2522_v59 }
 0x2ad   : > { %v2417_v45 = vpop.permute.xlu0 %2416 }
 0x2ae   : > { %v2516_v54 = vrot.slane %v2417_v45, %v2515_v52 }
 0x2b0   : > { %v2518_v63 = vsel %vm2517_vm3, %v2516_v54, %v2511_v9 }
 0x2b1   : > { %v2525_v0 = vsel %vm2524_vm4, %v2523_v62, %v2518_v63 }
 0x2b3   : > { %v2423_v29 = vpop.permute.xlu0 %2422 }
 0x2b4   : > { %v2530_v46 = vrot.slane %v2423_v29, %v2529_v55 }
 0x2b6   : > { %v2532_v47 = vsel %vm2531_vm6, %v2530_v46, %v2525_v0 }
 0x2b7   : > { %v2539_v1 = vrot.slane %v2532_v47, %v3702_v34 }
 0x2b9   : > { %v2546_v51 = vrot.slane %v2539_v1, %v3702_v34 }
 0x2bb   : > { %v2548_v56 = vadd.f32 %v2546_v51, %v1015_v61 }
 0x2bd   : > { %2549 = vst [vmem:[%s3998_s8] sm:$0x1] %v2548_v56 }
 0x2be PF: > { %p2995_p4 = scmp.ge.s32.totalorder %s3162_s29, 2  ;;  %s2629_s1 = sand.u32 1, %s3142_s24  }
 0x2bf   : > { %s2630_s11 = scalar_lea.sflag [#allocation3], %s2629_s1 }
 0x2c0   : > { %p2989_p7 = pnand %p2995_p4, %p3259_p8 }
 0x2c2   : > { %3133 = dma.done.wait (!%p2989_p7), %s2630_s11, 512  }
 0x2c3   : > { %3135 = vsyncadd (!%p2989_p7), %s2630_s11, 4294966784  ;;  %s2639_s20 = scalar_lea.sflag [#allocation5], %s2629_s1 }
 0x2c4   : > { %3137 = dma.done.wait (!%p2989_p7), %s2639_s20, 16  }
 0x2c5   : > { %3139 = vsyncadd (!%p2989_p7), %s2639_s20, 4294967280  ;;  %s24_s29 = sadd.s32 1, %s3162_s29   ;;  %s4146_s24 = smov %s3146_s25 }
 0x2c6   : > { %p21_p9 = scmp.ge.s32.totalorder %s24_s29, 4   ;;  %s4147_s25 = smov %s3150_s26 }
 0x2c7   : > { %s4148_s26 = smov %s3265_s14  ;;  %s4149_s27 = smov %s3158_s28 }
 0x2c8   : > { %s4150_s28 = smov %s4152_s9  ;;  %23 = sbr.rel (!%p21_p9) target bundleno = 11 (0xb), region = 116 }
 0x2cf   :  { %2655 = vsyncpa [#allocation3], 1 }
 0x2d0   :  { %2657 = vsyncpa [#allocation3 + $0x1], 1 }
 0x2d1   :  { %2658 = vsyncpa [#allocation5], 1 }
 0x2d2   :  { %2660 = vsyncpa [#allocation5 + $0x1], 1 }

</bundles_post_ra>
